<compile_context>
chip_gen: v7x
topology: tpu7x:2x2x1
jax: 0.10.0
libtpu: 0.0.40
codegen_flags: <defaults>
</compile_context>

<pallas_src>
import functools
import math

import jax
import jax.numpy as jnp
import numpy as np
from jax.experimental import pallas as pl
from jax.experimental.pallas import tpu as pltpu


def _layer_norm(x, gamma, beta, eps=1e-5):
    mean = jnp.mean(x, axis=-1, keepdims=True)
    xc = x - mean
    var = jnp.mean(xc * xc, axis=-1, keepdims=True)
    inv = jax.lax.rsqrt(var + eps)
    return xc * inv * gamma + beta


def _gelu(x):
    # tanh-approximate GELU (== nn.GELU(approximate='tanh')).
    # TODO(synk): PyTorch's default nn.GELU() is erf-based; erf has no
    #   guaranteed Mosaic lowering, so kernel AND reference use the tanh form.
    c = math.sqrt(2.0 / math.pi)
    return 0.5 * x * (1.0 + jnp.tanh(c * (x + 0.044715 * x * x * x)))


def _transformer_block_kernel(x_ref,
                              ln1_g_ref, ln1_b_ref, w_qkv_ref, w_out_ref,
                              b_out_ref, ln2_g_ref, ln2_b_ref, w1_ref, b1_ref,
                              w2_ref, b2_ref,
                              o_ref, x_scr,
                              *, num_heads, dim_head, scale):
    """One grid step = (one batch element, one transformer layer).

    x_ref  : VMEM (1, N, D)   block input (resident across the layer axis)
    *_ref  : VMEM (1, ., .)   this layer's parameters
    o_ref  : VMEM (1, N, D)   output block (written on the last layer)
    x_scr  : VMEM (N, D) f32  activations carried across layers
    """
    layer = pl.program_id(1)
    inner = num_heads * dim_head

    @pl.when(layer == 0)
    def _():
        x_scr[...] = x_ref[0].astype(jnp.float32)

    x = x_scr[...]                                              # (N, D) f32

    # ---- PreNorm + multi-head self-attention + residual -------------------
    xn = _layer_norm(x, ln1_g_ref[0], ln1_b_ref[0])
    qkv = jnp.dot(xn, w_qkv_ref[0],
                  preferred_element_type=jnp.float32)           # (N, 3*inner)

    proj = jnp.zeros_like(x)                                    # (N, D)
    for h in range(num_heads):                                  # small static unroll
        lo = h * dim_head
        hi = lo + dim_head
        q = qkv[:, lo:hi]                                       # (N, dh)
        k = qkv[:, inner + lo:inner + hi]                       # (N, dh)
        v = qkv[:, 2 * inner + lo:2 * inner + hi]               # (N, dh)
        # q @ k^T via dot_general (contract last dims) -> (N, N)
        dots = jax.lax.dot_general(
            q, k, (((1,), (1,)), ((), ())),
            preferred_element_type=jnp.float32) * scale
        dots = dots - jnp.max(dots, axis=-1, keepdims=True)
        p = jnp.exp(dots)
        inv_denom = pl.reciprocal(jnp.sum(p, axis=-1, keepdims=True),
                                  approx=True)                  # EUP, not VPU div
        attn = p * inv_denom
        oh = jnp.dot(attn, v, preferred_element_type=jnp.float32)   # (N, dh)
        # fold this head's slice of the output projection directly in
        proj = proj + jnp.dot(oh, w_out_ref[0, lo:hi, :],
                              preferred_element_type=jnp.float32)
    x = x + proj + b_out_ref[0]

    # ---- PreNorm + MLP (Linear -> GELU -> Linear) + residual ---------------
    xn2 = _layer_norm(x, ln2_g_ref[0], ln2_b_ref[0])
    h1 = jnp.dot(xn2, w1_ref[0], preferred_element_type=jnp.float32) + b1_ref[0]
    h1 = _gelu(h1)
    y = jnp.dot(h1, w2_ref[0], preferred_element_type=jnp.float32) + b2_ref[0]
    x = x + y

    x_scr[...] = x

    @pl.when(layer == pl.num_programs(1) - 1)
    def _():
        o_ref[0] = x.astype(o_ref.dtype)                        # one lane-dense store


def transformer_block(x, params, *, num_heads, dim_head):
    """Pallas implementation of TransformerBlock.forward (self-attention)."""
    B, N, dim = x.shape
    depth = params["w_qkv"].shape[0]
    inner = num_heads * dim_head
    mlp_dim = params["w1"].shape[-1]
    scale = dim_head ** (-0.5)

    kernel = functools.partial(_transformer_block_kernel,
                               num_heads=num_heads, dim_head=dim_head,
                               scale=scale)

    x_map = lambda b, l: (b, 0, 0)       # activations: indexed by batch only
    p_map = lambda b, l: (l, 0, 0)       # parameters:  indexed by layer only

    in_specs = [
        pl.BlockSpec((1, N, dim), x_map),             # x
        pl.BlockSpec((1, 1, dim), p_map),             # ln1 gamma
        pl.BlockSpec((1, 1, dim), p_map),             # ln1 beta
        pl.BlockSpec((1, dim, 3 * inner), p_map),     # W_qkv
        pl.BlockSpec((1, inner, dim), p_map),         # W_out
        pl.BlockSpec((1, 1, dim), p_map),             # b_out
        pl.BlockSpec((1, 1, dim), p_map),             # ln2 gamma
        pl.BlockSpec((1, 1, dim), p_map),             # ln2 beta
        pl.BlockSpec((1, dim, mlp_dim), p_map),       # W1
        pl.BlockSpec((1, 1, mlp_dim), p_map),         # b1
        pl.BlockSpec((1, mlp_dim, dim), p_map),       # W2
        pl.BlockSpec((1, 1, dim), p_map),             # b2
    ]

    return pl.pallas_call(
        kernel,
        out_shape=jax.ShapeDtypeStruct(x.shape, x.dtype),
        grid_spec=pltpu.PrefetchScalarGridSpec(
            num_scalar_prefetch=0,
            grid=(B, depth),
            in_specs=in_specs,
            out_specs=pl.BlockSpec((1, N, dim), x_map),
            scratch_shapes=[pltpu.VMEM((N, dim), jnp.float32)],
        ),
        compiler_params=pltpu.CompilerParams(
            dimension_semantics=("parallel", "arbitrary")),
    )(x,
      params["ln1_g"], params["ln1_b"], params["w_qkv"],
      params["w_out"], params["b_out"],
      params["ln2_g"], params["ln2_b"],
      params["w1"], params["b1"], params["w2"], params["b2"])


def _reference(x, params, *, num_heads, dim_head):
    """Pure-JAX reference mirroring the PyTorch TransformerBlock.forward."""
    depth = params["w_qkv"].shape[0]
    inner = num_heads * dim_head
    scale = dim_head ** (-0.5)
    B, N, _ = x.shape
    for l in range(depth):
        xn = _layer_norm(x, params["ln1_g"][l], params["ln1_b"][l])
        qkv = xn @ params["w_qkv"][l]                       # (B, N, 3*inner)
        q, k, v = jnp.split(qkv, 3, axis=-1)
        to_heads = lambda t: t.reshape(B, N, num_heads, dim_head).transpose(0, 2, 1, 3)
        q, k, v = to_heads(q), to_heads(k), to_heads(v)
        dots = jnp.einsum("bhnd,bhmd->bhnm", q, k) * scale
        attn = jax.nn.softmax(dots, axis=-1)
        out = jnp.einsum("bhnm,bhmd->bhnd", attn, v)
        out = out.transpose(0, 2, 1, 3).reshape(B, N, inner)
        x = x + out @ params["w_out"][l] + params["b_out"][l]
        xn2 = _layer_norm(x, params["ln2_g"][l], params["ln2_b"][l])
        h = _gelu(xn2 @ params["w1"][l] + params["b1"][l])
        x = x + h @ params["w2"][l] + params["b2"][l]
    return x


if __name__ == "__main__":
    # Small, TPU-lane-friendly shapes consistent with the module:
    #   dim=128, num_heads=2, dim_head=64 (inner=128), mlp_ratio=2 -> mlp=256,
    #   depth=2, batch=2, seq=16.
    B, N = 2, 16
    dim = 128
    num_heads, dim_head = 2, 64
    depth = 2
    mlp_ratio = 2.0
    inner = num_heads * dim_head
    mlp_dim = int(dim * mlp_ratio)

    key = jax.random.PRNGKey(0)
    key, kx = jax.random.split(key)
    x = jax.random.normal(kx, (B, N, dim), jnp.float32)

    def init_layer(k):
        ks = jax.random.split(k, 10)
        b_qkv = 1.0 / math.sqrt(dim)
        b_o = 1.0 / math.sqrt(inner)
        b_1 = 1.0 / math.sqrt(dim)
        b_2 = 1.0 / math.sqrt(mlp_dim)
        u = lambda kk, shape, bound: jax.random.uniform(kk, shape, jnp.float32,
                                                        -bound, bound)
        return dict(
            ln1_g=1.0 + 0.1 * jax.random.normal(ks[0], (1, dim), jnp.float32),
            ln1_b=0.1 * jax.random.normal(ks[1], (1, dim), jnp.float32),
            w_qkv=u(ks[2], (dim, 3 * inner), b_qkv),
            w_out=u(ks[3], (inner, dim), b_o),
            b_out=u(ks[4], (1, dim), b_o),
            ln2_g=1.0 + 0.1 * jax.random.normal(ks[5], (1, dim), jnp.float32),
            ln2_b=0.1 * jax.random.normal(ks[6], (1, dim), jnp.float32),
            w1=u(ks[7], (dim, mlp_dim), b_1),
            b1=u(ks[8], (1, mlp_dim), b_1),
            w2=u(ks[9], (mlp_dim, dim), b_2),
            b2=u(ks[9], (1, dim), b_2),
        )

    layer_keys = jax.random.split(key, depth)
    per_layer = [init_layer(layer_keys[l]) for l in range(depth)]
    params = {name: jnp.stack([per_layer[l][name] for l in range(depth)])
              for name in per_layer[0]}

    out = transformer_block(x, params, num_heads=num_heads, dim_head=dim_head)
    out = jax.block_until_ready(out)

    ref = _reference(x, params, num_heads=num_heads, dim_head=dim_head)
    np.testing.assert_allclose(np.asarray(out), np.asarray(ref),
                               rtol=2e-2, atol=2e-2)
    print("KERNEL_OK")
</pallas_src>

<mosaic_0001>
module attributes {stable_mosaic.version = 11 : i64} {
  func.func @_transformer_block_kernel(%arg0: i32, %arg1: i32, %arg2: memref<1x16x128xf32, #tpu.memory_space<vmem>>, %arg3: memref<1x1x128xf32, #tpu.memory_space<vmem>>, %arg4: memref<1x1x128xf32, #tpu.memory_space<vmem>>, %arg5: memref<1x128x384xf32, #tpu.memory_space<vmem>>, %arg6: memref<1x128x128xf32, #tpu.memory_space<vmem>>, %arg7: memref<1x1x128xf32, #tpu.memory_space<vmem>>, %arg8: memref<1x1x128xf32, #tpu.memory_space<vmem>>, %arg9: memref<1x1x128xf32, #tpu.memory_space<vmem>>, %arg10: memref<1x128x256xf32, #tpu.memory_space<vmem>>, %arg11: memref<1x1x256xf32, #tpu.memory_space<vmem>>, %arg12: memref<1x256x128xf32, #tpu.memory_space<vmem>>, %arg13: memref<1x1x128xf32, #tpu.memory_space<vmem>>, %arg14: memref<1x16x128xf32, #tpu.memory_space<vmem>>, %arg15: memref<16x128xf32, #tpu.memory_space<vmem>>) attributes {dimension_semantics = [#tpu.dimension_semantics<parallel>, #tpu.dimension_semantics<arbitrary>], iteration_bounds = array<i64: 2, 2>, scalar_prefetch = 0 : i64, scratch_operands = 1 : i64, tpu.core_type = #tpu.core_type<tc>, window_params = [{transform_indices = @transform_0, window_bounds = array<i64: 1, 16, 128>}, {transform_indices = @transform_1, window_bounds = array<i64: 1, 1, 128>}, {transform_indices = @transform_2, window_bounds = array<i64: 1, 1, 128>}, {transform_indices = @transform_3, window_bounds = array<i64: 1, 128, 384>}, {transform_indices = @transform_4, window_bounds = array<i64: 1, 128, 128>}, {transform_indices = @transform_5, window_bounds = array<i64: 1, 1, 128>}, {transform_indices = @transform_6, window_bounds = array<i64: 1, 1, 128>}, {transform_indices = @transform_7, window_bounds = array<i64: 1, 1, 128>}, {transform_indices = @transform_8, window_bounds = array<i64: 1, 128, 256>}, {transform_indices = @transform_9, window_bounds = array<i64: 1, 1, 256>}, {transform_indices = @transform_10, window_bounds = array<i64: 1, 256, 128>}, {transform_indices = @transform_11, window_bounds = array<i64: 1, 1, 128>}, {transform_indices = @transform_12, window_bounds = array<i64: 1, 16, 128>}]} {
    %c0_i32 = arith.constant 0 : i32
    %0 = arith.cmpi eq, %arg1, %c0_i32 : i32
    %1 = arith.extui %0 : i1 to i32
    %c0_i32_0 = arith.constant 0 : i32
    %2 = arith.cmpi ne, %1, %c0_i32_0 : i32
    scf.if %2 {
      %c0_69 = arith.constant 0 : index
      %c0_70 = arith.constant 0 : index
      %c0_71 = arith.constant 0 : index
      %135 = vector.load %arg2[%c0_69, %c0_70, %c0_71] : memref<1x16x128xf32, #tpu.memory_space<vmem>>, vector<1x16x128xf32>
      %136 = vector.shape_cast %135 : vector<1x16x128xf32> to vector<16x128xf32>
      %c0_72 = arith.constant 0 : index
      %c0_73 = arith.constant 0 : index
      %137 = vector.load %arg15[%c0_72, %c0_73] : memref<16x128xf32, #tpu.memory_space<vmem>>, vector<16x128xf32>
      tpu.vector_store %arg15[%c0_72, %c0_73], %136 {strides = array<i32>} : memref<16x128xf32, #tpu.memory_space<vmem>>, vector<16x128xf32>,
    } else {
    }
    %c0 = arith.constant 0 : index
    %c0_1 = arith.constant 0 : index
    %3 = vector.load %arg15[%c0, %c0_1] : memref<16x128xf32, #tpu.memory_space<vmem>>, vector<16x128xf32>
    %c0_2 = arith.constant 0 : index
    %c0_3 = arith.constant 0 : index
    %c0_4 = arith.constant 0 : index
    %4 = vector.load %arg3[%c0_2, %c0_3, %c0_4] : memref<1x1x128xf32, #tpu.memory_space<vmem>>, vector<1x1x128xf32>
    %5 = vector.shape_cast %4 : vector<1x1x128xf32> to vector<1x128xf32>
    %c0_5 = arith.constant 0 : index
    %c0_6 = arith.constant 0 : index
    %c0_7 = arith.constant 0 : index
    %6 = vector.load %arg4[%c0_5, %c0_6, %c0_7] : memref<1x1x128xf32, #tpu.memory_space<vmem>>, vector<1x1x128xf32>
    %7 = vector.shape_cast %6 : vector<1x1x128xf32> to vector<1x128xf32>
    %cst = arith.constant dense<0.000000e+00> : vector<16xf32>
    %8 = vector.multi_reduction <add>, %3, %cst [1] : vector<16x128xf32> to vector<16xf32>
    %9 = vector.shape_cast %8 : vector<16xf32> to vector<16x1xf32>
    %cst_8 = arith.constant 1.280000e+02 : f32
    %10 = vector.broadcast %cst_8 : f32 to vector<16x1xf32>
    %11 = arith.divf %9, %10 : vector<16x1xf32>
    %12 = vector.broadcast %11 : vector<16x1xf32> to vector<16x128xf32>
    %13 = arith.subf %3, %12 : vector<16x128xf32>
    %14 = arith.mulf %13, %13 : vector<16x128xf32>
    %cst_9 = arith.constant dense<0.000000e+00> : vector<16xf32>
    %15 = vector.multi_reduction <add>, %14, %cst_9 [1] : vector<16x128xf32> to vector<16xf32>
    %16 = vector.shape_cast %15 : vector<16xf32> to vector<16x1xf32>
    %cst_10 = arith.constant 1.280000e+02 : f32
    %17 = vector.broadcast %cst_10 : f32 to vector<16x1xf32>
    %18 = arith.divf %16, %17 : vector<16x1xf32>
    %cst_11 = arith.constant 9.99999974E-6 : f32
    %19 = vector.broadcast %cst_11 : f32 to vector<16x1xf32>
    %20 = arith.addf %18, %19 : vector<16x1xf32>
    %21 = math.rsqrt %20 : vector<16x1xf32>
    %22 = vector.broadcast %21 : vector<16x1xf32> to vector<16x128xf32>
    %23 = arith.mulf %13, %22 : vector<16x128xf32>
    %24 = vector.broadcast %5 : vector<1x128xf32> to vector<16x128xf32>
    %25 = arith.mulf %23, %24 : vector<16x128xf32>
    %26 = vector.broadcast %7 : vector<1x128xf32> to vector<16x128xf32>
    %27 = arith.addf %25, %26 : vector<16x128xf32>
    %c0_12 = arith.constant 0 : index
    %c0_13 = arith.constant 0 : index
    %c0_14 = arith.constant 0 : index
    %28 = vector.load %arg5[%c0_12, %c0_13, %c0_14] : memref<1x128x384xf32, #tpu.memory_space<vmem>>, vector<1x128x384xf32>
    %29 = vector.shape_cast %28 : vector<1x128x384xf32> to vector<128x384xf32>
    %cst_15 = arith.constant dense<0.000000e+00> : vector<16x384xf32>
    %30 = tpu.matmul %27, %29, %cst_15 {dimension_numbers = #tpu.dot_dimension_numbers<[1], [0], [0], [1], [0, 0, 1, 1], [], []>} : vector<16x128xf32>, vector<128x384xf32>, vector<16x384xf32> -> vector<16x384xf32>
    %cst_16 = arith.constant 0.000000e+00 : f32
    %31 = vector.broadcast %cst_16 : f32 to vector<16x128xf32>
    %32 = vector.extract_strided_slice %30 {offsets = [0, 0], sizes = [16, 64], strides = [1, 1]} : vector<16x384xf32> to vector<16x64xf32>
    %33 = vector.extract_strided_slice %30 {offsets = [0, 128], sizes = [16, 64], strides = [1, 1]} : vector<16x384xf32> to vector<16x64xf32>
    %34 = vector.extract_strided_slice %30 {offsets = [0, 256], sizes = [16, 64], strides = [1, 1]} : vector<16x384xf32> to vector<16x64xf32>
    %cst_17 = arith.constant dense<0.000000e+00> : vector<16x16xf32>
    %35 = tpu.matmul %32, %33, %cst_17 {dimension_numbers = #tpu.dot_dimension_numbers<[1], [1], [0], [0], [0, 0, 1, 0], [], []>} : vector<16x64xf32>, vector<16x64xf32>, vector<16x16xf32> -> vector<16x16xf32>
    %cst_18 = arith.constant 1.250000e-01 : f32
    %36 = vector.broadcast %cst_18 : f32 to vector<16x16xf32>
    %37 = arith.mulf %35, %36 : vector<16x16xf32>
    %cst_19 = arith.constant dense<0xFF800000> : vector<16xf32>
    %38 = vector.multi_reduction <maximumf>, %37, %cst_19 [1] : vector<16x16xf32> to vector<16xf32>
    %39 = vector.shape_cast %38 : vector<16xf32> to vector<16x1xf32>
    %40 = vector.broadcast %39 : vector<16x1xf32> to vector<16x16xf32>
    %41 = arith.subf %37, %40 : vector<16x16xf32>
    %42 = math.exp %41 : vector<16x16xf32>
    %cst_20 = arith.constant dense<0.000000e+00> : vector<16xf32>
    %43 = vector.multi_reduction <add>, %42, %cst_20 [1] : vector<16x16xf32> to vector<16xf32>
    %44 = vector.shape_cast %43 : vector<16xf32> to vector<16x1xf32>
    %45 = tpu.reciprocal %44 {approx = true} : vector<16x1xf32> -> vector<16x1xf32>
    %46 = vector.broadcast %45 : vector<16x1xf32> to vector<16x16xf32>
    %47 = arith.mulf %42, %46 : vector<16x16xf32>
    %cst_21 = arith.constant dense<0.000000e+00> : vector<16x64xf32>
    %48 = tpu.matmul %47, %34, %cst_21 {dimension_numbers = #tpu.dot_dimension_numbers<[1], [0], [0], [1], [0, 0, 1, 1], [], []>} : vector<16x16xf32>, vector<16x64xf32>, vector<16x64xf32> -> vector<16x64xf32>
    %c0_22 = arith.constant 0 : index
    %c0_23 = arith.constant 0 : index
    %c0_24 = arith.constant 0 : index
    %49 = vector.load %arg6[%c0_22, %c0_23, %c0_24] : memref<1x128x128xf32, #tpu.memory_space<vmem>>, vector<1x64x128xf32>
    %50 = vector.shape_cast %49 : vector<1x64x128xf32> to vector<64x128xf32>
    %cst_25 = arith.constant dense<0.000000e+00> : vector<16x128xf32>
    %51 = tpu.matmul %48, %50, %cst_25 {dimension_numbers = #tpu.dot_dimension_numbers<[1], [0], [0], [1], [0, 0, 1, 1], [], []>} : vector<16x64xf32>, vector<64x128xf32>, vector<16x128xf32> -> vector<16x128xf32>
    %52 = arith.addf %31, %51 : vector<16x128xf32>
    %53 = vector.extract_strided_slice %30 {offsets = [0, 64], sizes = [16, 64], strides = [1, 1]} : vector<16x384xf32> to vector<16x64xf32>
    %54 = vector.extract_strided_slice %30 {offsets = [0, 192], sizes = [16, 64], strides = [1, 1]} : vector<16x384xf32> to vector<16x64xf32>
    %55 = vector.extract_strided_slice %30 {offsets = [0, 320], sizes = [16, 64], strides = [1, 1]} : vector<16x384xf32> to vector<16x64xf32>
    %cst_26 = arith.constant dense<0.000000e+00> : vector<16x16xf32>
    %56 = tpu.matmul %53, %54, %cst_26 {dimension_numbers = #tpu.dot_dimension_numbers<[1], [1], [0], [0], [0, 0, 1, 0], [], []>} : vector<16x64xf32>, vector<16x64xf32>, vector<16x16xf32> -> vector<16x16xf32>
    %cst_27 = arith.constant 1.250000e-01 : f32
    %57 = vector.broadcast %cst_27 : f32 to vector<16x16xf32>
    %58 = arith.mulf %56, %57 : vector<16x16xf32>
    %cst_28 = arith.constant dense<0xFF800000> : vector<16xf32>
    %59 = vector.multi_reduction <maximumf>, %58, %cst_28 [1] : vector<16x16xf32> to vector<16xf32>
    %60 = vector.shape_cast %59 : vector<16xf32> to vector<16x1xf32>
    %61 = vector.broadcast %60 : vector<16x1xf32> to vector<16x16xf32>
    %62 = arith.subf %58, %61 : vector<16x16xf32>
    %63 = math.exp %62 : vector<16x16xf32>
    %cst_29 = arith.constant dense<0.000000e+00> : vector<16xf32>
    %64 = vector.multi_reduction <add>, %63, %cst_29 [1] : vector<16x16xf32> to vector<16xf32>
    %65 = vector.shape_cast %64 : vector<16xf32> to vector<16x1xf32>
    %66 = tpu.reciprocal %65 {approx = true} : vector<16x1xf32> -> vector<16x1xf32>
    %67 = vector.broadcast %66 : vector<16x1xf32> to vector<16x16xf32>
    %68 = arith.mulf %63, %67 : vector<16x16xf32>
    %cst_30 = arith.constant dense<0.000000e+00> : vector<16x64xf32>
    %69 = tpu.matmul %68, %55, %cst_30 {dimension_numbers = #tpu.dot_dimension_numbers<[1], [0], [0], [1], [0, 0, 1, 1], [], []>} : vector<16x16xf32>, vector<16x64xf32>, vector<16x64xf32> -> vector<16x64xf32>
    %c0_31 = arith.constant 0 : index
    %c64 = arith.constant 64 : index
    %c0_32 = arith.constant 0 : index
    %70 = vector.load %arg6[%c0_31, %c64, %c0_32] : memref<1x128x128xf32, #tpu.memory_space<vmem>>, vector<1x64x128xf32>
    %71 = vector.shape_cast %70 : vector<1x64x128xf32> to vector<64x128xf32>
    %cst_33 = arith.constant dense<0.000000e+00> : vector<16x128xf32>
    %72 = tpu.matmul %69, %71, %cst_33 {dimension_numbers = #tpu.dot_dimension_numbers<[1], [0], [0], [1], [0, 0, 1, 1], [], []>} : vector<16x64xf32>, vector<64x128xf32>, vector<16x128xf32> -> vector<16x128xf32>
    %73 = arith.addf %52, %72 : vector<16x128xf32>
    %74 = arith.addf %3, %73 : vector<16x128xf32>
    %c0_34 = arith.constant 0 : index
    %c0_35 = arith.constant 0 : index
    %c0_36 = arith.constant 0 : index
    %75 = vector.load %arg7[%c0_34, %c0_35, %c0_36] : memref<1x1x128xf32, #tpu.memory_space<vmem>>, vector<1x1x128xf32>
    %76 = vector.shape_cast %75 : vector<1x1x128xf32> to vector<1x128xf32>
    %77 = vector.broadcast %76 : vector<1x128xf32> to vector<16x128xf32>
    %78 = arith.addf %74, %77 : vector<16x128xf32>
    %c0_37 = arith.constant 0 : index
    %c0_38 = arith.constant 0 : index
    %c0_39 = arith.constant 0 : index
    %79 = vector.load %arg8[%c0_37, %c0_38, %c0_39] : memref<1x1x128xf32, #tpu.memory_space<vmem>>, vector<1x1x128xf32>
    %80 = vector.shape_cast %79 : vector<1x1x128xf32> to vector<1x128xf32>
    %c0_40 = arith.constant 0 : index
    %c0_41 = arith.constant 0 : index
    %c0_42 = arith.constant 0 : index
    %81 = vector.load %arg9[%c0_40, %c0_41, %c0_42] : memref<1x1x128xf32, #tpu.memory_space<vmem>>, vector<1x1x128xf32>
    %82 = vector.shape_cast %81 : vector<1x1x128xf32> to vector<1x128xf32>
    %cst_43 = arith.constant dense<0.000000e+00> : vector<16xf32>
    %83 = vector.multi_reduction <add>, %78, %cst_43 [1] : vector<16x128xf32> to vector<16xf32>
    %84 = vector.shape_cast %83 : vector<16xf32> to vector<16x1xf32>
    %cst_44 = arith.constant 1.280000e+02 : f32
    %85 = vector.broadcast %cst_44 : f32 to vector<16x1xf32>
    %86 = arith.divf %84, %85 : vector<16x1xf32>
    %87 = vector.broadcast %86 : vector<16x1xf32> to vector<16x128xf32>
    %88 = arith.subf %78, %87 : vector<16x128xf32>
    %89 = arith.mulf %88, %88 : vector<16x128xf32>
    %cst_45 = arith.constant dense<0.000000e+00> : vector<16xf32>
    %90 = vector.multi_reduction <add>, %89, %cst_45 [1] : vector<16x128xf32> to vector<16xf32>
    %91 = vector.shape_cast %90 : vector<16xf32> to vector<16x1xf32>
    %cst_46 = arith.constant 1.280000e+02 : f32
    %92 = vector.broadcast %cst_46 : f32 to vector<16x1xf32>
    %93 = arith.divf %91, %92 : vector<16x1xf32>
    %cst_47 = arith.constant 9.99999974E-6 : f32
    %94 = vector.broadcast %cst_47 : f32 to vector<16x1xf32>
    %95 = arith.addf %93, %94 : vector<16x1xf32>
    %96 = math.rsqrt %95 : vector<16x1xf32>
    %97 = vector.broadcast %96 : vector<16x1xf32> to vector<16x128xf32>
    %98 = arith.mulf %88, %97 : vector<16x128xf32>
    %99 = vector.broadcast %80 : vector<1x128xf32> to vector<16x128xf32>
    %100 = arith.mulf %98, %99 : vector<16x128xf32>
    %101 = vector.broadcast %82 : vector<1x128xf32> to vector<16x128xf32>
    %102 = arith.addf %100, %101 : vector<16x128xf32>
    %c0_48 = arith.constant 0 : index
    %c0_49 = arith.constant 0 : index
    %c0_50 = arith.constant 0 : index
    %103 = vector.load %arg10[%c0_48, %c0_49, %c0_50] : memref<1x128x256xf32, #tpu.memory_space<vmem>>, vector<1x128x256xf32>
    %104 = vector.shape_cast %103 : vector<1x128x256xf32> to vector<128x256xf32>
    %cst_51 = arith.constant dense<0.000000e+00> : vector<16x256xf32>
    %105 = tpu.matmul %102, %104, %cst_51 {dimension_numbers = #tpu.dot_dimension_numbers<[1], [0], [0], [1], [0, 0, 1, 1], [], []>} : vector<16x128xf32>, vector<128x256xf32>, vector<16x256xf32> -> vector<16x256xf32>
    %c0_52 = arith.constant 0 : index
    %c0_53 = arith.constant 0 : index
    %c0_54 = arith.constant 0 : index
    %106 = vector.load %arg11[%c0_52, %c0_53, %c0_54] : memref<1x1x256xf32, #tpu.memory_space<vmem>>, vector<1x1x256xf32>
    %107 = vector.shape_cast %106 : vector<1x1x256xf32> to vector<1x256xf32>
    %108 = vector.broadcast %107 : vector<1x256xf32> to vector<16x256xf32>
    %109 = arith.addf %105, %108 : vector<16x256xf32>
    %cst_55 = arith.constant 5.000000e-01 : f32
    %110 = vector.broadcast %cst_55 : f32 to vector<16x256xf32>
    %111 = arith.mulf %110, %109 : vector<16x256xf32>
    %cst_56 = arith.constant 4.471500e-02 : f32
    %112 = vector.broadcast %cst_56 : f32 to vector<16x256xf32>
    %113 = arith.mulf %112, %109 : vector<16x256xf32>
    %114 = arith.mulf %113, %109 : vector<16x256xf32>
    %115 = arith.mulf %114, %109 : vector<16x256xf32>
    %116 = arith.addf %109, %115 : vector<16x256xf32>
    %cst_57 = arith.constant 0.797884583 : f32
    %117 = vector.broadcast %cst_57 : f32 to vector<16x256xf32>
    %118 = arith.mulf %117, %116 : vector<16x256xf32>
    %119 = math.tanh %118 : vector<16x256xf32>
    %cst_58 = arith.constant 1.000000e+00 : f32
    %120 = vector.broadcast %cst_58 : f32 to vector<16x256xf32>
    %121 = arith.addf %120, %119 : vector<16x256xf32>
    %122 = arith.mulf %111, %121 : vector<16x256xf32>
    %c0_59 = arith.constant 0 : index
    %c0_60 = arith.constant 0 : index
    %c0_61 = arith.constant 0 : index
    %123 = vector.load %arg12[%c0_59, %c0_60, %c0_61] : memref<1x256x128xf32, #tpu.memory_space<vmem>>, vector<1x256x128xf32>
    %124 = vector.shape_cast %123 : vector<1x256x128xf32> to vector<256x128xf32>
    %cst_62 = arith.constant dense<0.000000e+00> : vector<16x128xf32>
    %125 = tpu.matmul %122, %124, %cst_62 {dimension_numbers = #tpu.dot_dimension_numbers<[1], [0], [0], [1], [0, 0, 1, 1], [], []>} : vector<16x256xf32>, vector<256x128xf32>, vector<16x128xf32> -> vector<16x128xf32>
    %c0_63 = arith.constant 0 : index
    %c0_64 = arith.constant 0 : index
    %c0_65 = arith.constant 0 : index
    %126 = vector.load %arg13[%c0_63, %c0_64, %c0_65] : memref<1x1x128xf32, #tpu.memory_space<vmem>>, vector<1x1x128xf32>
    %127 = vector.shape_cast %126 : vector<1x1x128xf32> to vector<1x128xf32>
    %128 = vector.broadcast %127 : vector<1x128xf32> to vector<16x128xf32>
    %129 = arith.addf %125, %128 : vector<16x128xf32>
    %130 = arith.addf %78, %129 : vector<16x128xf32>
    %c0_66 = arith.constant 0 : index
    %c0_67 = arith.constant 0 : index
    %131 = vector.load %arg15[%c0_66, %c0_67] : memref<16x128xf32, #tpu.memory_space<vmem>>, vector<16x128xf32>
    tpu.vector_store %arg15[%c0_66, %c0_67], %130 {strides = array<i32>} : memref<16x128xf32, #tpu.memory_space<vmem>>, vector<16x128xf32>,
    %c1_i32 = arith.constant 1 : i32
    %132 = arith.cmpi eq, %arg1, %c1_i32 : i32
    %133 = arith.extui %132 : i1 to i32
    %c0_i32_68 = arith.constant 0 : i32
    %134 = arith.cmpi ne, %133, %c0_i32_68 : i32
    scf.if %134 {
      %c0_69 = arith.constant 0 : index
      %c0_70 = arith.constant 0 : index
      %c0_71 = arith.constant 0 : index
      %135 = vector.load %arg14[%c0_69, %c0_70, %c0_71] : memref<1x16x128xf32, #tpu.memory_space<vmem>>, vector<1x16x128xf32>
      %136 = vector.shape_cast %135 : vector<1x16x128xf32> to vector<16x128xf32>
      %137 = vector.shape_cast %130 : vector<16x128xf32> to vector<1x16x128xf32>
      tpu.vector_store %arg14[%c0_69, %c0_70, %c0_71], %137 {strides = array<i32>} : memref<1x16x128xf32, #tpu.memory_space<vmem>>, vector<1x16x128xf32>,
    } else {
    }
    return
  }
  func.func @transform_0(%arg0: i32, %arg1: i32) -> (i32, i32, i32) {
    %c0_i32 = arith.constant 0 : i32
    %c0_i32_0 = arith.constant 0 : i32
    %c0_i32_1 = arith.constant 0 : i32
    return %arg0, %c0_i32, %c0_i32_0 : i32, i32, i32
  }
  func.func @transform_1(%arg0: i32, %arg1: i32) -> (i32, i32, i32) {
    %c0_i32 = arith.constant 0 : i32
    %c0_i32_0 = arith.constant 0 : i32
    %c0_i32_1 = arith.constant 0 : i32
    return %arg1, %c0_i32, %c0_i32_0 : i32, i32, i32
  }
  func.func @transform_2(%arg0: i32, %arg1: i32) -> (i32, i32, i32) {
    %c0_i32 = arith.constant 0 : i32
    %c0_i32_0 = arith.constant 0 : i32
    %c0_i32_1 = arith.constant 0 : i32
    return %arg1, %c0_i32, %c0_i32_0 : i32, i32, i32
  }
  func.func @transform_3(%arg0: i32, %arg1: i32) -> (i32, i32, i32) {
    %c0_i32 = arith.constant 0 : i32
    %c0_i32_0 = arith.constant 0 : i32
    %c0_i32_1 = arith.constant 0 : i32
    return %arg1, %c0_i32, %c0_i32_0 : i32, i32, i32
  }
  func.func @transform_4(%arg0: i32, %arg1: i32) -> (i32, i32, i32) {
    %c0_i32 = arith.constant 0 : i32
    %c0_i32_0 = arith.constant 0 : i32
    %c0_i32_1 = arith.constant 0 : i32
    return %arg1, %c0_i32, %c0_i32_0 : i32, i32, i32
  }
  func.func @transform_5(%arg0: i32, %arg1: i32) -> (i32, i32, i32) {
    %c0_i32 = arith.constant 0 : i32
    %c0_i32_0 = arith.constant 0 : i32
    %c0_i32_1 = arith.constant 0 : i32
    return %arg1, %c0_i32, %c0_i32_0 : i32, i32, i32
  }
  func.func @transform_6(%arg0: i32, %arg1: i32) -> (i32, i32, i32) {
    %c0_i32 = arith.constant 0 : i32
    %c0_i32_0 = arith.constant 0 : i32
    %c0_i32_1 = arith.constant 0 : i32
    return %arg1, %c0_i32, %c0_i32_0 : i32, i32, i32
  }
  func.func @transform_7(%arg0: i32, %arg1: i32) -> (i32, i32, i32) {
    %c0_i32 = arith.constant 0 : i32
    %c0_i32_0 = arith.constant 0 : i32
    %c0_i32_1 = arith.constant 0 : i32
    return %arg1, %c0_i32, %c0_i32_0 : i32, i32, i32
  }
  func.func @transform_8(%arg0: i32, %arg1: i32) -> (i32, i32, i32) {
    %c0_i32 = arith.constant 0 : i32
    %c0_i32_0 = arith.constant 0 : i32
    %c0_i32_1 = arith.constant 0 : i32
    return %arg1, %c0_i32, %c0_i32_0 : i32, i32, i32
  }
  func.func @transform_9(%arg0: i32, %arg1: i32) -> (i32, i32, i32) {
    %c0_i32 = arith.constant 0 : i32
    %c0_i32_0 = arith.constant 0 : i32
    %c0_i32_1 = arith.constant 0 : i32
    return %arg1, %c0_i32, %c0_i32_0 : i32, i32, i32
  }
  func.func @transform_10(%arg0: i32, %arg1: i32) -> (i32, i32, i32) {
    %c0_i32 = arith.constant 0 : i32
    %c0_i32_0 = arith.constant 0 : i32
    %c0_i32_1 = arith.constant 0 : i32
    return %arg1, %c0_i32, %c0_i32_0 : i32, i32, i32
  }
  func.func @transform_11(%arg0: i32, %arg1: i32) -> (i32, i32, i32) {
    %c0_i32 = arith.constant 0 : i32
    %c0_i32_0 = arith.constant 0 : i32
    %c0_i32_1 = arith.constant 0 : i32
    return %arg1, %c0_i32, %c0_i32_0 : i32, i32, i32
  }
  func.func @transform_12(%arg0: i32, %arg1: i32) -> (i32, i32, i32) {
    %c0_i32 = arith.constant 0 : i32
    %c0_i32_0 = arith.constant 0 : i32
    %c0_i32_1 = arith.constant 0 : i32
    return %arg0, %c0_i32, %c0_i32_0 : i32, i32, i32
  }
}

</mosaic_0001>

<bundles_post_ra>
// kernel: tpu_custom_call.1
= control target key start
LH: loop header
LB: loop body
LE: loop exit
PB: predicated region body
PF: predicated region fallthrough
CT: control target
= control target key end

     0   :  { %s3940_s0 = inlined_call_operand.hbm [shape: f32[2,16,128], index: 0, kind: input, shape index: {}]   ;;  %s3941_s1 = inlined_call_operand.vmem [shape: f32[2,1,128], index: 1, kind: input, shape index: {}]   ;;  %s3942_s2 = inlined_call_operand.hbm [shape: f32[2,1,128], index: 2, kind: input, shape index: {}]   ;;  %s3943_s3 = inlined_call_operand.hbm [shape: f32[2,128,384], index: 3, kind: input, shape index: {}]   ;;  %s3944_s4 = inlined_call_operand.hbm [shape: f32[2,128,128], index: 4, kind: input, shape index: {}]   ;;  %s3945_s5 = inlined_call_operand.vmem [shape: f32[2,1,128], index: 5, kind: input, shape index: {}]   ;;  %s3946_s6 = inlined_call_operand.vmem [shape: f32[2,1,128], index: 6, kind: input, shape index: {}]   ;;  %s3947_s7 = inlined_call_operand.vmem [shape: f32[2,1,128], index: 7, kind: input, shape index: {}]   ;;  %s3948_s8 = inlined_call_operand.hbm [shape: f32[2,128,256], index: 8, kind: input, shape index: {}]   ;;  %s3949_s9 = inlined_call_operand.vmem [shape: f32[2,1,256], index: 9, kind: input, shape index: {}]   ;;  %s3950_s10 = inlined_call_operand.hbm [shape: f32[2,256,128], index: 10, kind: input, shape index: {}]   ;;  %s3951_s11 = inlined_call_operand.vmem [shape: f32[2,1,128], index: 11, kind: input, shape index: {}]   ;;  %s3952_s12 = inlined_call_operand.hbm [shape: f32[2,16,128], index: 12, kind: output, shape index: {}]  }
   0x1   :  { %3984 = sst [smem:[#allocation36_spill]] %s3940_s0 }
   0x2   :  { %3985 = sst [smem:[#allocation37_spill]] %s3941_s1 }
   0x3   :  { %3986 = sst [smem:[#allocation38_spill]] %s3942_s2 }
   0x4   :  { %3987 = sst [smem:[#allocation39_spill]] %s3943_s3 }
   0x5   :  { %3988 = sst [smem:[#allocation40_spill]] %s3944_s4 }
   0x6   :  { %3989 = sst [smem:[#allocation41_spill]] %s3945_s5 }
   0x7   :  { %3990 = sst [smem:[#allocation42_spill]] %s3946_s6 }
   0x8   :  { %3991 = sst [smem:[#allocation43_spill]] %s3947_s7 }
   0x9   :  { %3992 = sst [smem:[#allocation44_spill]] %s3948_s8 }
   0xa   :  { %3993 = sst [smem:[#allocation45_spill]] %s3949_s9 }
   0xb   :  { %3994 = sst [smem:[#allocation46_spill]] %s3950_s10 }
   0xc   :  { %3995 = sst [smem:[#allocation47_spill]] %s3951_s11 }
   0xd   :  { %3996 = sst [smem:[#allocation48_spill]] %s3952_s12 }
   0xe   :  { %17 = vsyncpa [#allocation4], 0 }
   0xf   :  { %19 = vsyncpa [#allocation4 + $0x1], 0 }
  0x10   :  { %20 = vsyncpa [#allocation7], 0 }
  0x11   :  { %22 = vsyncpa [#allocation7 + $0x1], 0 }
  0x12   :  { %23 = vsyncpa [#allocation10], 0 }
  0x13   :  { %25 = vsyncpa [#allocation10 + $0x1], 0 }
  0x14   :  { %26 = vsyncpa [#allocation13], 0 }
  0x15   :  { %28 = vsyncpa [#allocation13 + $0x1], 0 }
  0x16   :  { %29 = vsyncpa [#allocation5], 0 }
  0x17   :  { %31 = vsyncpa [#allocation5 + $0x1], 0  ;;  %s3153_s21 = smov 0   ;;  %s3155_s22 = smov 0  }
  0x18   :  { %s3157_s23 = smov 0   ;;  %s3159_s24 = smov 0  }
  0x19   :  { %s3161_s25 = smov 0   ;;  %s3163_s26 = smov 0  }
  0x1a   :  { %s3165_s27 = smov 0   ;;  %s3167_s28 = smov 0  }
  0x1b   :  { %s3169_s29 = smov 0   ;;  %s3171_s30 = smov 0  }
  0x1c   :  { %s3173_s13 = smov 0  }
  0x1d LB: > { %3997 = sst [smem:[#allocation20_spill]] %s3033_s22  ;;  %s3207_s14 = sadd.s32 4294967295, %s3069_s13   ;;  %s3069_s13 = sphi %s3173_s13, %s37_s13   ;;  %s3065_s30 = sphi %s3171_s30, %s4078_s30   ;;  %s3061_s29 = sphi %s3169_s29, %s4077_s29   ;;  %s3057_s28 = sphi %s3167_s28, %s4076_s28   ;;  %s3053_s27 = sphi %s3165_s27, %s4075_s27   ;;  %s3049_s26 = sphi %s3163_s26, %s4074_s26   ;;  %s3045_s25 = sphi %s3161_s25, %s4073_s25   ;;  %s3041_s24 = sphi %s3159_s24, %s4072_s24   ;;  %s3037_s23 = sphi %s3157_s23, %s4071_s23   ;;  %s3033_s22 = sphi %s3155_s22, %s4070_s22   ;;  %s3029_s21 = sphi %s3153_s21, %s4069_s21  }
  0x1e   : > { %3998 = sst [smem:[#allocation21_spill]] %s3037_s23  ;;  %s46_s15 = sadd.s32 1, %s3061_s29 }
  0x1f   : > { %3999 = sst [smem:[#allocation22_spill]] %s3041_s24  ;;  %p3210_p0 = scmp.ge.s32.totalorder %s46_s15, 2 }
  0x20   : > { %4000 = sst [smem:[#allocation23_spill]] %s3045_s25  ;;  %p3958_p1 = scmp.eq.s32.totalorder %s3069_s13, 0 }
  0x21   : > { %4001 = sst [smem:[#allocation24_spill]] %s3049_s26  ;;  %p3957_p2 = scmp.eq.s32.totalorder %s3207_s14, 0 }
  0x22   : > { %4002 = sst [smem:[#allocation25_spill]] %s3053_s27  ;;  %s108_s17 = sadd.s32 1, %s3037_s23 }
  0x23   : > { %4003 = sst [smem:[#allocation26_spill]] %s3057_s28  ;;  %s4080_s15 = smov (%p3210_p0, %s46_s15), 0 }
  0x24   : > { %4004 = sst [smem:[#allocation27_spill]] %s3061_s29  ;;  %p115_p3 = scmp.ne.s32.totalorder %s3037_s23, %s3033_s22 }
  0x25   : > { %4005 = sst [smem:[#allocation28_spill]] %s3065_s30  ;;  %p121_p4 = scmp.ne.s32.totalorder %s3033_s22, %s3029_s21 }
  0x26   : > { %4006 = sst [smem:[#allocation29_spill]] %s3069_s13  ;;  %s105_s18 = ssub.s32 %s3061_s29, %s4080_s15 }
  0x27   : > { %s4007_s16 = scalar_select %p3210_p0, 1, 0 }
  0x28   : > { %4008 = sst [smem:[#allocation30_spill]] %s4080_s15  ;;  %p106_p5 = scmp.eq.s32.totalorder %s105_s18, 0 }
  0x29   : > { %p117_p6 = por %p115_p3, %p3958_p1  ;;  %p3230_p7 = por %p121_p4, %p3957_p2 }
  0x2a   : > { %p3956_p8 = scmp.lt.s32.totalorder %s3069_s13, 4  ;;  %s3959_s12 = sand.u32 1, %s3069_s13  }
  0x2b   : > { %s4009_s19 = scalar_select %p3230_p7, 1, 0 }
  0x2c   : > { %s3236_s20 = scalar_select %p106_p5, %s3037_s23, %s108_s17  }
  0x2d   : > { %4010 = sst [smem:[#allocation31_spill]] %s4009_s19  ;;  %s3240_s28 = sand.u32 1, %s3037_s23  }
  0x2e   : > { %4011 = sst [smem:[#allocation32_spill]] %s3236_s20  ;;  %s2146_s9 = sshll.u32 %s3061_s29, 4 }
  0x2f   : > { %s435_s21 = scalar_lea.vmem [#allocation6], %s3240_s28  ;;  %s4012_s2 = sld [smem:[#allocation38_spill]] }
  0x30   : > { %s442_s11 = sshll.u32 %s435_s21, 4  ;;  %p3253_p9 = pnand %p3956_p8, %p117_p6  ;;  %s3249_s11 = int_to_ptr.vmem [resolvable:$true] %s442_s11 }
  0x31   : > { %s3261_s21 = scalar_lea.sflag [#allocation7], %s3959_s12 }
  0x32   : > { %s4013_s17 = scalar_select %p3253_p9, 1, 0 }
  0x33   : > { %p3267_p13 = pneg %p3253_p9 }
  0x35   : > { %s3247_s18 = scalar_lea.hbm %s4012_s2, %s2146_s9  ;;  %s2760_s23 = scalar_lea.hbm %s4012_s2, 32 }
  0x36   : > { %s2755_s7 = scalar_lea.hbm %s3247_s18, 16  ;;  %p2761_p5 = scmp.lt.u32.totalorder %s3247_s18, %s4012_s2 }
  0x37   : > { %p2756_p12 = scmp.ne.s32.totalorder %s3247_s18, %s2755_s7  ;;  %p2762_p6 = scmp.lt.u32.totalorder %s2760_s23, %s2755_s7 }
  0x38   : > { %p2764_p2 = scmp.lt.u32.totalorder %s2755_s7, %s3247_s18 }
  0x39   : > { %p2758_p3 = pnand %p3267_p13, %p2756_p12  ;;  %p2763_p8 = por %p2762_p6, %p2761_p5 }
  0x3b   : > { %p2759_p4 = pneg %p2758_p3  ;;  %p2765_p1 = por %p2764_p2, %p2763_p8 }
  0x3d   : > { %p2766_p10 = pnand %p2765_p1, %p2759_p4 }
  0x3f   : > { %2769 = shalt.err (!%p2766_p10)
}
  0x40   : > { %s2770_s12 = scalar_lea.vmem %s3249_s11, 16  ;;  %s3071_s20 = smov [#allocation6]  }
  0x41   : > { %p2771_p12 = scmp.ne.s32.totalorder %s3249_s11, %s2770_s12  ;;  %s2775_s15 = sshll.u32 %s3071_s20, 4  ;;  %s2776_s15 = int_to_ptr.vmem [resolvable:$false] %s2775_s15 }
  0x42   : > { %s2777_s5 = scalar_lea.vmem %s2776_s15, 32  ;;  %p2778_p7 = scmp.lt.s32.totalorder %s3249_s11, %s2776_s15 }
  0x43   : > { %p2773_p3 = pnand %p2771_p12, %p3267_p13  ;;  %p2779_p0 = scmp.lt.s32.totalorder %s2777_s5, %s2770_s12 }
  0x45   : > { %p2774_p11 = pneg %p2773_p3  ;;  %p2780_p5 = por %p2779_p0, %p2778_p7 }
  0x47   : > { %p2781_p6 = pnand %p2780_p5, %p2774_p11 }
  0x49   : > { %2784 = shalt.err (!%p2781_p6)
}
  0x4a   : > { %2596 = dma.hbm_to_vmem [thread:$0]  (!%p3253_p9), %s3247_s18, 16, %s3249_s11, %s3261_s21  }
  0x4b   : > { %p4015_p1 = scmp.lt.s32.totalorder %s3069_s13, 5  ;;  %p4016_p2 = scmp.ge.s32.totalorder %s3069_s13, 1 }
  0x4c   : > { %s2148_s12 = sshll.u32 %s3240_s28, 7  ;;  %s2194_s23 = sshll.u32 %s3061_s29, 11 }
  0x4d   : > { %p3295_p8 = pnand %p4016_p2, %p4015_p1  ;;  %s4018_s4 = sld [smem:[#allocation40_spill]] }
  0x4e   : > { %s474_s5 = scalar_lea.vmem [#allocation9], %s2148_s12  ;;  %s4019_s11 = sand.u32 1, %s3069_s13  }
  0x4f   : > { %s4017_s6 = scalar_select %p3295_p8, 1, 0 }
  0x50   : > { %s481_s2 = sshll.u32 %s474_s5, 4  ;;  %s3310_s18 = scalar_lea.sflag [#allocation10], %s4019_s11  ;;  %s3306_s2 = int_to_ptr.vmem [resolvable:$true] %s481_s2 }
  0x53   : > { %s3304_s15 = scalar_lea.hbm %s4018_s4, %s2194_s23  ;;  %s2790_s23 = scalar_lea.hbm %s4018_s4, 4096 }
  0x54   : > { %s2785_s1 = scalar_lea.hbm %s3304_s15, 2048  ;;  %p2791_p11 = scmp.lt.u32.totalorder %s3304_s15, %s4018_s4 }
  0x55   : > { %p2786_p0 = scmp.ne.s32.totalorder %s3304_s15, %s2785_s1  ;;  %p2792_p4 = scmp.lt.u32.totalorder %s2790_s23, %s2785_s1 }
  0x56   : > { %p2794_p3 = scmp.lt.u32.totalorder %s2785_s1, %s3304_s15 }
  0x57   : > { %p2788_p7 = pnand %p2786_p0, %p3267_p13  ;;  %p2793_p12 = por %p2792_p4, %p2791_p11 }
  0x59   : > { %p2789_p10 = pneg %p2788_p7  ;;  %p2795_p5 = por %p2794_p3, %p2793_p12 }
  0x5b   : > { %p2796_p6 = pnand %p2795_p5, %p2789_p10 }
  0x5d   : > { %2799 = shalt.err (!%p2796_p6)
}
  0x5e   : > { %s2800_s12 = scalar_lea.vmem %s3306_s2, 2048  ;;  %s3072_s27 = smov [#allocation9]  }
  0x5f   : > { %p2801_p1 = scmp.ne.s32.totalorder %s3306_s2, %s2800_s12  ;;  %s2805_s5 = sshll.u32 %s3072_s27, 4  ;;  %s2806_s5 = int_to_ptr.vmem [resolvable:$false] %s2805_s5 }
  0x60   : > { %s2807_s19 = scalar_lea.vmem %s2806_s5, 4096  ;;  %p2808_p7 = scmp.lt.s32.totalorder %s3306_s2, %s2806_s5 }
  0x61   : > { %p2803_p2 = pnand %p2801_p1, %p3267_p13  ;;  %p2809_p8 = scmp.lt.s32.totalorder %s2807_s19, %s2800_s12 }
  0x63   : > { %p2804_p0 = pneg %p2803_p2  ;;  %p2810_p11 = por %p2809_p8, %p2808_p7 }
  0x65   : > { %p2811_p4 = pnand %p2810_p11, %p2804_p0 }
  0x67   : > { %2814 = shalt.err (!%p2811_p4)
}
  0x68   : > { %s3965_s1 = smov 128   ;;  %s3967_s11 = smov 8  }
  0x69   : > { %2602 = dma.hbm_to_vmem [thread:$0]  (!%p3253_p9), %s3304_s15, 2048, %s3306_s2, %s3310_s18, %s3965_s1, %s3965_s1, %s3967_s11  }
  0x6a   : > { %s2140_s7 = sadd.s32 4294967294, %s3069_s13   ;;  %s49_s23 = sadd.s32 1, %s3065_s30 }
  0x6b   : > { %p4020_p8 = scmp.ne.s32.totalorder %s4007_s16, 0  ;;  %s56_s20 = sadd.s32 1, %s3049_s26 }
  0x6c   : > { %p63_p10 = scmp.ne.s32.totalorder %s3049_s26, %s3045_s25  ;;  %p69_p3 = scmp.ne.s32.totalorder %s3045_s25, %s3041_s24 }
  0x6d   : > { %s4082_s23 = smov (!%p4020_p8, %s49_s23), %s3065_s30  ;;  %p4021_p5 = scmp.eq.s32.totalorder %s3069_s13, 0 }
  0x6e   : > { %p51_p12 = scmp.ge.s32.totalorder %s4082_s23, 2  ;;  %p379_p1 = scmp.eq.s32.totalorder %s3207_s14, 3 }
  0x6f   : > { %p3349_p6 = por %p4021_p5, %p63_p10  ;;  %p4024_p2 = scmp.eq.s32.totalorder %s3207_s14, 0 }
  0x70   : > { %s4084_s23 = smov (%p51_p12, %s4082_s23), 0  ;;  %p3362_p7 = por %p379_p1, %p63_p10 }
  0x71   : > { %4023 = sst [smem:[#allocation33_spill]] %s4084_s23  ;;  %p3358_p0 = por %p4024_p2, %p69_p3 }
  0x72   : > { %s4026_s16 = scalar_select %p3362_p7, 1, 0 }
  0x73   : > { %s4025_s2 = scalar_select %p3358_p0, 1, 0 }
  0x74   : > { %s53_s15 = ssub.s32 %s3065_s30, %s4084_s23  ;;  %p385_p11 = scmp.eq.s32.totalorder %s2140_s7, 3 }
  0x75   : > { %p54_p4 = scmp.eq.s32.totalorder %s53_s15, 0  ;;  %s405_s27 = sand.u32 1, %s3049_s26  }
  0x76   : > { %p3369_p8 = por %p385_p11, %p69_p3  ;;  %s2143_s1 = sshll.u32 %s405_s27, 4 }
  0x77   : > { %s3374_s19 = scalar_select %p54_p4, %s3049_s26, %s56_s20  }
  0x78   : > { %s4027_s5 = scalar_select %p3369_p8, 1, 0 }
  0x79   : > { %4029 = sst [smem:[#allocation35_spill]] %s3374_s19  ;;  %s2193_s11 = sshll.u32 %s3065_s30, 8 }
  0x7a   : > { %4028 = sst [smem:[#allocation34_spill]] %s4027_s5  ;;  %s4030_s0 = sld [smem:[#allocation36_spill]] }
  0x7b   : > { %s409_s23 = scalar_lea.vmem [#allocation3], %s2143_s1  ;;  %p4031_p10 = scmp.lt.s32.totalorder %s3069_s13, 4 }
  0x7c   : > { %s416_s7 = sshll.u32 %s409_s23, 4  ;;  %s2573_s20 = smul.u32 384, %s3240_s28  ;;  %s3390_s7 = int_to_ptr.vmem [resolvable:$true] %s416_s7 }
  0x7d   : > { %p3386_p12 = pnand %p4031_p10, %p3349_p6  ;;  %s2574_s4 = smul.u32 6144, %s3061_s29 }
  0x7e   : > { %s3394_s24 = scalar_lea.sflag [#allocation4], %s405_s27 }
  0x7f   : > { %p2817_p5 = pneg %p3386_p12 }
  0x80   : > { %s3380_s22 = scalar_lea.hbm %s4030_s0, %s2193_s11  ;;  %s2820_s12 = scalar_lea.hbm %s4030_s0, 512 }
  0x81   : > { %s2815_s11 = scalar_lea.hbm %s3380_s22, 256  ;;  %p2821_p6 = scmp.lt.u32.totalorder %s3380_s22, %s4030_s0 }
  0x82   : > { %p2816_p3 = scmp.ne.s32.totalorder %s3380_s22, %s2815_s11  ;;  %p2822_p11 = scmp.lt.u32.totalorder %s2820_s12, %s2815_s11 }
  0x83   : > { %p2824_p10 = scmp.lt.u32.totalorder %s2815_s11, %s3380_s22 }
  0x84   : > { %p2818_p1 = pnand %p2817_p5, %p2816_p3  ;;  %p2823_p4 = por %p2822_p11, %p2821_p6 }
  0x86   : > { %p2819_p2 = pneg %p2818_p1  ;;  %p2825_p8 = por %p2824_p10, %p2823_p4 }
  0x88   : > { %p2826_p7 = pnand %p2825_p8, %p2819_p2 }
  0x8a   : > { %2829 = shalt.err (!%p2826_p7)
}
  0x8b   : > { %s2830_s27 = scalar_lea.vmem %s3390_s7, 256  ;;  %s3075_s1 = smov [#allocation3]  }
  0x8c   : > { %p2831_p3 = scmp.ne.s32.totalorder %s3390_s7, %s2830_s27  ;;  %s2835_s23 = sshll.u32 %s3075_s1, 4  ;;  %s2836_s23 = int_to_ptr.vmem [resolvable:$false] %s2835_s23 }
  0x8d   : > { %s2837_s30 = scalar_lea.vmem %s2836_s23, 512  ;;  %p2838_p9 = scmp.lt.s32.totalorder %s3390_s7, %s2836_s23 }
  0x8e   : > { %p2833_p1 = pnand %p2831_p3, %p2817_p5  ;;  %p2839_p6 = scmp.lt.s32.totalorder %s2837_s30, %s2830_s27 }
  0x90   : > { %p2834_p0 = pneg %p2833_p1  ;;  %p2840_p11 = por %p2839_p6, %p2838_p9 }
  0x92   : > { %p2841_p4 = pnand %p2840_p11, %p2834_p0 }
  0x94   : > { %2844 = shalt.err (!%p2841_p4)
}
  0x95   : > { %s4033_s19 = smov 8   ;;  %s4034_s11 = smov 128  }
  0x96   : > { %2593 = dma.hbm_to_vmem [thread:$0]  (!%p3386_p12), %s3380_s22, 256, %s3390_s7, %s3394_s24, %s4034_s11, %s4034_s11, %s4033_s19  }
  0x97   : > { %s4035_s3 = sld [smem:[#allocation39_spill]]  ;;  %s453_s15 = scalar_lea.vmem [#allocation8], %s2573_s20 }
  0x98   : > { %s460_s23 = sshll.u32 %s453_s15, 4  ;;  %s3434_s23 = int_to_ptr.vmem [resolvable:$true] %s460_s23 }
  0x9d   : > { %s3430_s27 = scalar_lea.hbm %s4035_s3, %s2574_s4  ;;  %s2850_s24 = scalar_lea.hbm %s4035_s3, 12288 }
  0x9e   : > { %s2845_s30 = scalar_lea.hbm %s3430_s27, 6144  ;;  %p2851_p8 = scmp.lt.u32.totalorder %s3430_s27, %s4035_s3 }
  0x9f   : > { %p2846_p9 = scmp.ne.s32.totalorder %s3430_s27, %s2845_s30  ;;  %p2852_p12 = scmp.lt.u32.totalorder %s2850_s24, %s2845_s30 }
  0xa0   : > { %p2854_p2 = scmp.lt.u32.totalorder %s2845_s30, %s3430_s27 }
  0xa1   : > { %p2848_p0 = pnand %p2846_p9, %p3267_p13  ;;  %p2853_p5 = por %p2852_p12, %p2851_p8 }
  0xa3   : > { %p2849_p7 = pneg %p2848_p0  ;;  %p2855_p10 = por %p2854_p2, %p2853_p5 }
  0xa5   : > { %p2856_p3 = pnand %p2855_p10, %p2849_p7 }
  0xa7   : > { %2859 = shalt.err (!%p2856_p3)
}
  0xa8   : > { %s2860_s20 = scalar_lea.vmem %s3434_s23, 6144  ;;  %s3076_s1 = smov [#allocation8]  }
  0xa9   : > { %p2861_p1 = scmp.ne.s32.totalorder %s3434_s23, %s2860_s20  ;;  %s2865_s15 = sshll.u32 %s3076_s1, 4  ;;  %s2866_s15 = int_to_ptr.vmem [resolvable:$false] %s2865_s15 }
  0xaa   : > { %s2867_s22 = scalar_lea.vmem %s2866_s15, 12288  ;;  %p2868_p4 = scmp.lt.s32.totalorder %s3434_s23, %s2866_s15 }
  0xab   : > { %p2863_p6 = pnand %p2861_p1, %p3267_p13  ;;  %p2869_p9 = scmp.lt.s32.totalorder %s2867_s22, %s2860_s20 }
  0xad   : > { %p2864_p11 = pneg %p2863_p6  ;;  %p2870_p0 = por %p2869_p9, %p2868_p4 }
  0xaf   : > { %p2871_p8 = pnand %p2870_p0, %p2864_p11 }
  0xb1   : > { %2874 = shalt.err (!%p2871_p8)
}
  0xb2   : > { %s3077_s30 = smov 384   ;;  %s3078_s7 = smov 24  }
  0xb3   : > { %p4036_p7 = scmp.ne.s32.totalorder %s4013_s17, 0  ;;  %s2151_s24 = sshll.u32 %s3240_s28, 8 }
  0xb4   : > { %s2195_s4 = sshll.u32 %s3061_s29, 12  ;;  %s4037_s8 = sld [smem:[#allocation44_spill]] }
  0xb5   : > { %2599 = dma.hbm_to_vmem [thread:$0]  (!%p4036_p7), %s3430_s27, 6144, %s3434_s23, %s3261_s21, %s3077_s30, %s3077_s30, %s3078_s7  }
  0xb6   : > { %s513_s15 = scalar_lea.vmem [#allocation11], %s2151_s24 }
  0xb7   : > { %s520_s22 = sshll.u32 %s513_s15, 4  ;;  %s3469_s22 = int_to_ptr.vmem [resolvable:$true] %s520_s22 }
  0xba   : > { %s3465_s1 = scalar_lea.hbm %s4037_s8, %s2195_s4  ;;  %s2880_s23 = scalar_lea.hbm %s4037_s8, 8192 }
  0xbb   : > { %s2875_s0 = scalar_lea.hbm %s3465_s1, 4096  ;;  %p2881_p10 = scmp.lt.u32.totalorder %s3465_s1, %s4037_s8 }
  0xbc   : > { %p2876_p12 = scmp.ne.s32.totalorder %s3465_s1, %s2875_s0  ;;  %p2882_p3 = scmp.lt.u32.totalorder %s2880_s23, %s2875_s0 }
  0xbd   : > { %p2884_p6 = scmp.lt.u32.totalorder %s2875_s0, %s3465_s1 }
  0xbe   : > { %p2878_p5 = pnand %p2876_p12, %p3267_p13  ;;  %p2883_p1 = por %p2882_p3, %p2881_p10 }
  0xc0   : > { %p2879_p2 = pneg %p2878_p5  ;;  %p2885_p11 = por %p2884_p6, %p2883_p1 }
  0xc2   : > { %p2886_p4 = pnand %p2885_p11, %p2879_p2 }
  0xc4   : > { %2889 = shalt.err (!%p2886_p4)
}
  0xc5   : > { %s2890_s12 = scalar_lea.vmem %s3469_s22, 4096  ;;  %s3079_s20 = smov [#allocation11]  }
  0xc6   : > { %p2891_p9 = scmp.ne.s32.totalorder %s3469_s22, %s2890_s12  ;;  %s2895_s15 = sshll.u32 %s3079_s20, 4  ;;  %s2896_s15 = int_to_ptr.vmem [resolvable:$false] %s2895_s15 }
  0xc7   : > { %s2897_s21 = scalar_lea.vmem %s2896_s15, 8192  ;;  %p2898_p12 = scmp.lt.s32.totalorder %s3469_s22, %s2896_s15 }
  0xc8   : > { %p2893_p0 = pnand %p2891_p9, %p3267_p13  ;;  %p2899_p5 = scmp.lt.s32.totalorder %s2897_s21, %s2890_s12 }
  0xca   : > { %p2894_p8 = pneg %p2893_p0  ;;  %p2900_p10 = por %p2899_p5, %p2898_p12 }
  0xcc   : > { %p2901_p3 = pnand %p2900_p10, %p2894_p8 }
  0xce   : > { %2904 = shalt.err (!%p2901_p3)
}
  0xcf   : > { %s3080_s0 = smov 256   ;;  %s3081_s27 = smov 16  }
  0xd0   : > { %2605 = dma.hbm_to_vmem [thread:$0]  (!%p4036_p7), %s3465_s1, 4096, %s3469_s22, %s3310_s18, %s3080_s0, %s3080_s0, %s3081_s27  }
  0xd1   : > { %s4038_s10 = sld [smem:[#allocation46_spill]]  ;;  %s541_s12 = scalar_lea.vmem [#allocation12], %s2151_s24 }
  0xd2   : > { %s548_s20 = sshll.u32 %s541_s12, 4  ;;  %s538_s15 = scalar_lea.sflag [#allocation13], %s3240_s28  ;;  %s3502_s20 = int_to_ptr.vmem [resolvable:$true] %s548_s20 }
  0xd7   : > { %s3498_s7 = scalar_lea.hbm %s4038_s10, %s2195_s4  ;;  %s2910_s4 = scalar_lea.hbm %s4038_s10, 8192 }
  0xd8   : > { %s2905_s21 = scalar_lea.hbm %s3498_s7, 4096  ;;  %p2911_p11 = scmp.lt.u32.totalorder %s3498_s7, %s4038_s10 }
  0xd9   : > { %p2906_p2 = scmp.ne.s32.totalorder %s3498_s7, %s2905_s21  ;;  %p2912_p4 = scmp.lt.u32.totalorder %s2910_s4, %s2905_s21 }
  0xda   : > { %p2914_p0 = scmp.lt.u32.totalorder %s2905_s21, %s3498_s7 }
  0xdb   : > { %p2908_p1 = pnand %p2906_p2, %p3267_p13  ;;  %p2913_p9 = por %p2912_p4, %p2911_p11 }
  0xdd   : > { %p2909_p6 = pneg %p2908_p1  ;;  %p2915_p8 = por %p2914_p0, %p2913_p9 }
  0xdf   : > { %p2916_p12 = pnand %p2915_p8, %p2909_p6 }
  0xe1   : > { %2919 = shalt.err (!%p2916_p12)
}
  0xe2   : > { %s2920_s24 = scalar_lea.vmem %s3502_s20, 4096  ;;  %s3082_s27 = smov [#allocation12]  }
  0xe3   : > { %p2921_p5 = scmp.ne.s32.totalorder %s3502_s20, %s2920_s24  ;;  %s2925_s23 = sshll.u32 %s3082_s27, 4  ;;  %s2926_s23 = int_to_ptr.vmem [resolvable:$false] %s2925_s23 }
  0xe4   : > { %s2927_s30 = scalar_lea.vmem %s2926_s23, 8192  ;;  %p2928_p2 = scmp.lt.s32.totalorder %s3502_s20, %s2926_s23 }
  0xe5   : > { %p2923_p10 = pnand %p2921_p5, %p3267_p13  ;;  %p2929_p1 = scmp.lt.s32.totalorder %s2927_s30, %s2920_s24 }
  0xe7   : > { %p2924_p3 = pneg %p2923_p10  ;;  %p2930_p11 = por %p2929_p1, %p2928_p2 }
  0xe9   : > { %p2931_p4 = pnand %p2930_p11, %p2924_p3 }
  0xeb   : > { %2934 = shalt.err (!%p2931_p4)
}
  0xec   : > { %2608 = dma.hbm_to_vmem [thread:$0]  (!%p4036_p7), %s3498_s7, 4096, %s3502_s20, %s538_s15, %s4034_s11, %s4034_s11, %s4033_s19  }
  0xed   : > { %p4039_p13 = scmp.ne.s32.totalorder %s4017_s6, 0 }
  0xee   : > { %s3534_s9 = sand.u32 (!%p4039_p13), 1, %s3045_s25   ;;  %p4040_p6 = scmp.ne.s32.totalorder (!%p4039_p13), %s4025_s2, 0 }
  0xef   : > { %566 = sbr.rel (%p4039_p13) target bundleno = 3126 (0xc36), region = 68  ;;  %s3977_s12 = sshll.u32 (!%p4039_p13), %s3534_s9, 4 }
  0xf0   : > { %s569_s17 = scalar_lea.sflag (!%p4039_p13), [#allocation4], %s3534_s9  ;;  %s3540_s21 = scalar_lea.vmem (!%p4039_p13), [#allocation3], %s3977_s12 }
  0xf6   : > { %3008 = dma.done.wait (%p4040_p6), %s569_s17, 256  }
  0xf7   : > { %3010 = vsyncadd (%p4040_p6), %s569_s17, 4294967040  ;;  %s4041_s28 = sld [smem:[#allocation20_spill]]  ;;  %s4042_s6 = sld [smem:[#allocation31_spill]] }
  0xf8   : > { %s577_s19 = sand.u32 1, %s3207_s14  }
  0xf9   : > { %s578_s7 = scalar_lea.sflag [#allocation7], %s577_s19 }
  0xfd   : > { %s3548_s11 = sand.u32 1, %s4041_s28   ;;  %p4043_p7 = scmp.ne.s32.totalorder %s4042_s6, 0 }
  0xff   : > { %3012 = dma.done.wait (%p4043_p7), %s578_s7, 6160  }
 0x100   : > { %3014 = vsyncadd (%p4043_p7), %s578_s7, 4294961136  ;;  %s2575_s15 = smul.u32 384, %s3548_s11  ;;  %s2159_s2 = sshll.u32 %s3548_s11, 7 }
 0x101   : > { %s595_s1 = scalar_lea.sflag [#allocation10], %s577_s19  ;;  %s3559_s4 = scalar_lea.vmem [#allocation9], %s2159_s2 }
 0x102   : > { %s3557_s18 = scalar_lea.vmem [#allocation8], %s2575_s15 }
 0x103   : > { %3016 = dma.done.wait (%p4043_p7), %s595_s1, 6144  }
 0x104   : > { %3018 = vsyncadd (%p4043_p7), %s595_s1, 4294961152  ;;  %s2160_s14 = sshll.u32 %s3548_s11, 8  ;;  %s613_s0 = scalar_lea.sflag [#allocation13], %s3548_s11 }
 0x105   : > { %s3566_s22 = scalar_lea.vmem [#allocation11], %s2160_s14  ;;  %s3569_s24 = scalar_lea.vmem [#allocation12], %s2160_s14 }
 0x106   : > { %3020 = dma.done.wait (%p4043_p7), %s613_s0, 4096  }
 0x107   : > { %3022 = vsyncadd (%p4043_p7), %s613_s0, 4294963200  ;;  %s4044_s27 = sld [smem:[#allocation25_spill]]  ;;  %s4046_s6 = sld [smem:[#allocation41_spill]] }
 0x108   : > { %s4047_s0 = sld [smem:[#allocation42_spill]]  ;;  %s4048_s8 = sld [smem:[#allocation43_spill]] }
 0x109   : > { %s4049_s26 = sld [smem:[#allocation47_spill]]  ;;  %s4050_s28 = sld [smem:[#allocation45_spill]] }
 0x10a   : > { %s4051_s7 = sshll.u32 %s3534_s9, 4 }
 0x10b   : > { %s3607_s15 = scalar_lea.vmem [#allocation14], %s4051_s7 }
 0x10d   : > { %p700_p9 = scmp.lt.s32.totalorder %s4044_s27, 1  ;;  %p2164_p0 = scmp.ne.s32.totalorder %s4044_s27, 0 }
 0x10e   : > { %v723_v0 = vld [vmem:[%s3540_s21] sm:$0xff] (!%p2164_p0)  ;;  %v724_v1 = vld [vmem:[%s3540_s21 + $0x8] sm:$0xff] (!%p2164_p0) }
 0x10f   : > { %s3577_s23 = scalar_select %p700_p9, %s4044_s27, 1 }
 0x110   : > { %722 = sbr.rel (%p2164_p0) target bundleno = 279 (0x117), region = 96  ;;  %725 = vst [vmem:[#allocation2] sm:$0xff] (!%p2164_p0), %v723_v0  ;;  %726 = vst [vmem:[#allocation2 + $0x8] sm:$0xff] (!%p2164_p0), %v724_v1 }
 0x111   : > { %s705_s2 = scalar_lea.vmem %s4046_s6, %s3577_s23  ;;  %s708_s20 = scalar_lea.vmem %s4047_s0, %s3577_s23 }
 0x112   : > { %s711_s10 = scalar_lea.vmem %s4048_s8, %s3577_s23  ;;  %s2163_s29 = sshll.u32 %s3577_s23, 1 }
 0x113   : > { %s718_s25 = scalar_lea.vmem %s4049_s26, %s3577_s23  ;;  %s3603_s19 = scalar_lea.vmem %s4050_s28, %s2163_s29 }
 0x117 PF: > { %v3612_v2 = vld [vmem:[#allocation2] sm:$0xff]  ;;  %v3615_v3 = vld [vmem:[#allocation2 + $0x8] sm:$0xff]  ;;  %v774_v5 = vld [vmem:[%s3557_s18 + $0x20] sm:$0xff]  ;;  %s4052_s26 = sld [smem:[#allocation37_spill]]  ;;  %s4054_s13 = scalar_lea.vmem [#allocation6], %s3548_s11  ;;  %vm970_vm0 = vcmask 523264  }
 0x118   : > { %731 = vadd.xlane.f32.xlu0 %v3612_v2  ;;  %v771_v4 = vld [vmem:[%s3557_s18 + $0x8] sm:$0xff]  ;;  %v770_v6 = vld [vmem:[%s3557_s18] sm:$0xff]  ;;  %v773_v8 = vld [vmem:[%s3557_s18 + $0x18] sm:$0xff]  ;;  %vm1060_vm2 = vcmask 130048   ;;  %s3084_s5 = smov 64  }
 0x119   : > { %v2391_v7 = vpack.c.bf16 %v774_v5, %v771_v4  ;;  %v777_v9 = vld [vmem:[%s3557_s18 + $0x38] sm:$0xff]  ;;  %v780_v10 = vld [vmem:[%s3557_s18 + $0x50] sm:$0xff]  ;;  %v2393_v11 = vpack.c.bf16 %v773_v8, %v770_v6  ;;  %v775_v14 = vld [vmem:[%s3557_s18 + $0x28] sm:$0xff]  ;;  %v3083_v8 = vmov 0.0  }
 0x11a   : > { %v2395_v12 = vpack.c.bf16 %v780_v10, %v777_v9  ;;  %v772_v13 = vld [vmem:[%s3557_s18 + $0x10] sm:$0xff]  ;;  %v779_v17 = vld [vmem:[%s3557_s18 + $0x48] sm:$0xff]  ;;  %v786_v19 = vld [vmem:[%s3557_s18 + $0x80] sm:$0xff]  ;;  %882 = vmatprep.mubr.f32.mxu0 %v3083_v8 }
 0x11b   : > { %v776_v15 = vld [vmem:[%s3557_s18 + $0x30] sm:$0xff]  ;;  %2392 = vmatprep.subr.bf16.mxu0 %v2391_v7  ;;  %v2423_v16 = vpack.c.bf16 %v775_v14, %v772_v13  ;;  %v783_v18 = vld [vmem:[%s3557_s18 + $0x68] sm:$0xff]  ;;  %v778_v21 = vld [vmem:[%s3557_s18 + $0x40] sm:$0xff] }
 0x11c   : > { %733 = vadd.xlane.f32.xlu0 %v3615_v3  ;;  %2394 = vmatpush1.bf16.msra.mxu0 %v2393_v11  ;;  %v2397_v20 = vpack.c.bf16 %v779_v17, %v776_v15  ;;  %v781_v22 = vld [vmem:[%s3557_s18 + $0x58] sm:$0xff]  ;;  %v2399_v23 = vpack.c.bf16 %v786_v19, %v783_v18  ;;  %v782_v25 = vld [vmem:[%s3557_s18 + $0x60] sm:$0xff]  ;;  %v792_v37 = vld [vmem:[%s3557_s18 + $0xb0] sm:$0xff] }
 0x11d   : > { %2396 = vmatprep.subr.bf16.mxu0 %v2395_v12  ;;  %2424 = vmatprep.subr.bf16.mxu1 %v2423_v16  ;;  %v2427_v24 = vpack.c.bf16 %v781_v22, %v778_v21  ;;  %v785_v26 = vld [vmem:[%s3557_s18 + $0x78] sm:$0xff]  ;;  %v784_v38 = vld [vmem:[%s3557_s18 + $0x70] sm:$0xff]  ;;  %v787_v40 = vld [vmem:[%s3557_s18 + $0x88] sm:$0xff]  ;;  %s4053_s29 = scalar_lea.vmem %s4052_s26, %s3577_s23 }
 0x11e   : > { %2426 = vmatpush3.bf16.msra.mxu1 %v2423_v16  ;;  %v2401_v27 = vpack.c.bf16 %v785_v26, %v782_v25  ;;  %v789_v36 = vld [vmem:[%s3557_s18 + $0x98] sm:$0xff]  ;;  %v788_v41 = vld [vmem:[%s3557_s18 + $0x90] sm:$0xff]  ;;  %v791_v42 = vld [vmem:[%s3557_s18 + $0xa8] sm:$0xff]  ;;  %v2431_v43 = vpack.c.bf16 %v787_v40, %v784_v38 }
 0x11f   : > { %2428 = vmatprep.subr.bf16.mxu1 %v2427_v24  ;;  %v2403_v39 = vpack.c.bf16 %v792_v37, %v789_v36  ;;  %v2405_v44 = vpack.c.bf16 %v791_v42, %v788_v41  ;;  %v795_v45 = vld [vmem:[%s3557_s18 + $0xc8] sm:$0xff]  ;;  %v798_v46 = vld [vmem:[%s3557_s18 + $0xe0] sm:$0xff]  ;;  %v793_v49 = vld [vmem:[%s3557_s18 + $0xb8] sm:$0xff] }
 0x120   : > { %2398 = vmatpush1.bf16.msra.mxu0 %v2397_v20  ;;  %v790_v47 = vld [vmem:[%s3557_s18 + $0xa0] sm:$0xff]  ;;  %v2407_v48 = vpack.c.bf16 %v798_v46, %v795_v45  ;;  %v797_v51 = vld [vmem:[%s3557_s18 + $0xd8] sm:$0xff]  ;;  %v804_v55 = vld [vmem:[%s3557_s18 + $0x110] sm:$0xff] }
 0x121   : > { %2400 = vmatprep.subr.bf16.mxu0 %v2399_v23  ;;  %v794_v50 = vld [vmem:[%s3557_s18 + $0xc0] sm:$0xff]  ;;  %v2435_v52 = vpack.c.bf16 %v793_v49, %v790_v47  ;;  %v801_v54 = vld [vmem:[%s3557_s18 + $0xf8] sm:$0xff]  ;;  %v796_v56 = vld [vmem:[%s3557_s18 + $0xd0] sm:$0xff] }
 0x122   : > { %2430 = vmatpush3.bf16.msra.mxu1 %v2427_v24  ;;  %v2409_v53 = vpack.c.bf16 %v797_v51, %v794_v50  ;;  %v2411_v57 = vpack.c.bf16 %v804_v55, %v801_v54  ;;  %v799_v58 = vld [vmem:[%s3557_s18 + $0xe8] sm:$0xff]  ;;  %v800_v59 = vld [vmem:[%s3557_s18 + $0xf0] sm:$0xff]  ;;  %v810_v0 = vld [vmem:[%s3557_s18 + $0x140] sm:$0xff] }
 0x123   : > { %2432 = vmatprep.subr.bf16.mxu1 %v2431_v43  ;;  %v803_v60 = vld [vmem:[%s3557_s18 + $0x108] sm:$0xff]  ;;  %v2439_v61 = vpack.c.bf16 %v799_v58, %v796_v56  ;;  %v802_v1 = vld [vmem:[%s3557_s18 + $0x100] sm:$0xff]  ;;  %v805_v5 = vld [vmem:[%s3557_s18 + $0x118] sm:$0xff] }
 0x124   : > { %2402 = vmatpush1.bf16.msra.mxu0 %v2401_v27  ;;  %v2413_v62 = vpack.c.bf16 %v803_v60, %v800_v59  ;;  %v807_v63 = vld [vmem:[%s3557_s18 + $0x128] sm:$0xff]  ;;  %v806_v6 = vld [vmem:[%s3557_s18 + $0x120] sm:$0xff]  ;;  %v809_v7 = vld [vmem:[%s3557_s18 + $0x138] sm:$0xff]  ;;  %v2443_v9 = vpack.c.bf16 %v805_v5, %v802_v1 }
 0x125   : > { %2404 = vmatprep.subr.bf16.mxu0 %v2403_v39  ;;  %v2415_v4 = vpack.c.bf16 %v810_v0, %v807_v63  ;;  %v2417_v10 = vpack.c.bf16 %v809_v7, %v806_v6  ;;  %v813_v11 = vld [vmem:[%s3557_s18 + $0x158] sm:$0xff]  ;;  %v816_v12 = vld [vmem:[%s3557_s18 + $0x170] sm:$0xff]  ;;  %v811_v15 = vld [vmem:[%s3557_s18 + $0x148] sm:$0xff] }
 0x126   : > { %2434 = vmatpush3.bf16.msra.mxu1 %v2431_v43  ;;  %v808_v13 = vld [vmem:[%s3557_s18 + $0x130] sm:$0xff]  ;;  %v2419_v14 = vpack.c.bf16 %v816_v12, %v813_v11  ;;  %v815_v17 = vld [vmem:[%s3557_s18 + $0x168] sm:$0xff]  ;;  %v814_v20 = vld [vmem:[%s3557_s18 + $0x160] sm:$0xff] }
 0x127   : > { %2436 = vmatprep.subr.bf16.mxu1 %v2435_v52  ;;  %v812_v16 = vld [vmem:[%s3557_s18 + $0x150] sm:$0xff]  ;;  %v2447_v18 = vpack.c.bf16 %v811_v15, %v808_v13  ;;  %v817_v21 = vld [vmem:[%s3557_s18 + $0x178] sm:$0xff]  ;;  %vm3694_vm1 = vmpackc.low %vm970_vm0, %vm970_vm0 }
 0x128   : > { %2406 = vmatpush1.bf16.msra.mxu0 %v2405_v44  ;;  %v2421_v19 = vpack.c.bf16 %v815_v17, %v812_v16  ;;  %v2451_v22 = vpack.c.bf16 %v817_v21, %v814_v20 }
 0x129   : > { %2408 = vmatprep.subr.bf16.mxu0 %v2407_v48 }
 0x12a   : > { %2438 = vmatpush3.bf16.msra.mxu1 %v2435_v52 }
 0x12b   : > { %2440 = vmatprep.subr.bf16.mxu1 %v2439_v61 }
 0x12c   : > { %2410 = vmatpush1.bf16.msra.mxu0 %v2409_v53 }
 0x12d   : > { %2412 = vmatprep.subr.bf16.mxu0 %v2411_v57 }
 0x12e   : > { %2442 = vmatpush3.bf16.msra.mxu1 %v2439_v61 }
 0x12f   : > { %2444 = vmatprep.subr.bf16.mxu1 %v2443_v9 }
 0x130   : > { %2414 = vmatpush1.bf16.msra.mxu0 %v2413_v62 }
 0x131   : > { %2416 = vmatprep.subr.bf16.mxu0 %v2415_v4 }
 0x132   : > { %2446 = vmatpush3.bf16.msra.mxu1 %v2443_v9 }
 0x133   : > { %2448 = vmatprep.subr.bf16.mxu1 %v2447_v18 }
 0x134   : > { %2418 = vmatpush1.bf16.msra.mxu0 %v2417_v10 }
 0x135   : > { %2420 = vmatprep.subr.bf16.mxu0 %v2419_v14 }
 0x136   : > { %2450 = vmatpush3.bf16.msra.mxu1 %v2447_v18 }
 0x137   : > { %2452 = vmatprep.subr.bf16.mxu1 %v2451_v22 }
 0x138   : > { %2422 = vmatpush1.bf16.msra.mxu0 %v2421_v19 }
 0x13a   : > { %2454 = vmatpush3.bf16.msra.mxu1 %v2451_v22 }
 0x1a5   : > { %v732_v28 = vpop.xlane.xlu0 %731 }
 0x1a6   : > { %v736_v29 = vmul.f32 0.0078125, %v732_v28 }
 0x1a8   : > { %v3635_v30 = vsub.f32 %v3612_v2, %v736_v29 }
 0x1a9   : > { %v734_v31 = vpop.xlane.xlu0 %733 }
 0x1aa   : > { %v737_v32 = vmul.f32 0.0078125, %v734_v31  ;;  %v740_v33 = vmul.f32 %v3635_v30, %v3635_v30  ;;  %v2165_v31 = vld [vmem:[%s4053_s29] ss:$0 sm:$0xff] }
 0x1ac   : > { %v3640_v34 = vsub.f32 %v3615_v3, %v737_v32  ;;  %742 = vadd.xlane.f32.xlu1 %v740_v33  ;;  %v2166_v33 = vld [vmem:[%s4054_s13] ss:$0 sm:$0xff] }
 0x1ae   : > { %v741_v35 = vmul.f32 %v3640_v34, %v3640_v34 }
 0x1b0   : > { %744 = vadd.xlane.f32.xlu1 %v741_v35 }
 0x239   : > { %v743_v23 = vpop.xlane.xlu1 %742 }
 0x23a   : > { %v746_v24 = vmul.f32 0.0078125, %v743_v23 }
 0x23c   : > { %v748_v25 = vadd.f32 1e-05, %v746_v24 }
 0x23d   : > { %v745_v26 = vpop.xlane.xlu1 %744 }
 0x23e   : > { %2723 = vrsqrt.f32 %v748_v25  ;;  %v747_v27 = vmul.f32 0.0078125, %v745_v26 }
 0x240   : > { %v749_v28 = vadd.f32 1e-05, %v747_v27 }
 0x242   : > { %2725 = vrsqrt.f32 %v749_v28 }
 0x248   : > { %v2724_v29 = vpop.eup %2723 }
 0x249   : > { %v752_v32 = vmul.f32 %v2724_v29, %v3635_v30 }
 0x24b   : > { %v760_v35 = vmul.f32 %v2165_v31, %v752_v32 }
 0x24c   : > { %v2726_v36 = vpop.eup %2725 }
 0x24d   : > { %v768_v37 = vadd.f32 %v2166_v33, %v760_v35  ;;  %v753_v38 = vmul.f32 %v2726_v36, %v3640_v34 }
 0x24f   : > { %883 = vmatmul.mubr.f32.vlgmr.msra.gmra.mrb[0].mxu0 %v768_v37  ;;  %2322 = vmatprep.mubr.f32.mxu1 %v768_v37  ;;  %v761_v39 = vmul.f32 %v2165_v31, %v753_v38 }
 0x250   : > { %888 = vmatprep.mubr.f32.mxu0 %v3083_v8 }
 0x251   : > { %v769_v40 = vadd.f32 %v2166_v33, %v761_v39 }
 0x253   : > { %889 = vmatmul.mubr.f32.gmra.mrb[2].mxu0 %v769_v40  ;;  %2323 = vmatmul.mubr.f32.vlgmr.msra.gmra.mrb[0].mxu1 %v769_v40 }
 0x322   : > { %v884_v41 = vpop.f32.mrb[0].mxu0 }
 0x323   : > { %v886_v42 = vpop.f32.mrb[1].mxu0  ;;  %2329 = vmatprep.mubr.msk.f32.mxu0 %vm970_vm0, %v884_v41 }
 0x326   : > { %v890_v30 = vpop.f32.mrb[2].mxu0  ;;  %v3688_v43 = vpop.f32.mrb[0].mxu1 }
 0x327   : > { %v892_v44 = vpop.f32.mrb[3].mxu0  ;;  %v3690_v45 = vpop.f32.mrb[1].mxu1 }
 0x328   : > { %v2713_v46 = vpack.i.bf16 %v892_v44, %v886_v42  ;;  %v2455_v47 = vpack.c.bf16 %v892_v44, %v886_v42  ;;  %v2718_v48 = vpack.i.bf16 %v3688_v43, %v3690_v45  ;;  %v2461_v49 = vpack.c.bf16 %v3688_v43, %v3690_v45  ;;  %v1165_v42 = vld [vmem:[%s3559_s4 + $0x8] sm:$0xff]  ;;  %v1376_v43 = vld [vmem:[%s3559_s4 + $0x40] sm:$0xff]  ;;  %v1378_v45 = vld [vmem:[%s3559_s4 + $0x50] sm:$0xff] }
 0x329   : > { %v1377_v44 = vld [vmem:[%s3559_s4 + $0x48] sm:$0xff] }
 0x32a   : > { %2457 = vmatprep.subr.msk.bf16.mxu0 %vm3694_vm1, %v2455_v47  ;;  %2462 = vmatprep.subr.bf16.mxu1 %v2461_v49  ;;  %v2475_v34 = vpack.c.bf16 %v1377_v44, %v1376_v43 }
 0x32b   : > { %2460 = vmatpush3.bf16.xpose.msk.msra.mxu0 %vm3694_vm1, %v2455_v47  ;;  %2464 = vmatpush3.bf16.msra.mxu1 %v2461_v49  ;;  %v1381_v49 = vld [vmem:[%s3559_s4 + $0x68] sm:$0xff] }
 0x332   : > { %2330 = vmatmul.mubr.msk.f32.vlgmr.msra.gmra.mrb[4].mxu0 %vm970_vm0, %v890_v30 }
 0x405   : > { %v2331_v50 = vpop.f32.mrb[4].mxu0 }
 0x406   : > { %v1059_v51 = vmul.f32 0.125, %v2331_v50  ;;  %v1049_v52 = vpop.f32.mrb[5].mxu0 }
 0x407   : > { %v1058_v53 = vmul.f32 0.125, %v1049_v52  ;;  %v1383_v52 = vld [vmem:[%s3559_s4 + $0x78] sm:$0xff] }
 0x408   : > { %v1064_v54 = vsel %vm1060_vm2, %v1059_v51, -inf }
 0x409   : > { %1065 = vmax.xlane.f32.xlu1 %v1064_v54  ;;  %v1061_v55 = vsel %vm1060_vm2, %v1058_v53, -inf }
 0x40a   : > { %1062 = vmax.xlane.f32.xlu0 %v1061_v55 }
 0x496   : > { %v1066_v56 = vpop.xlane.xlu1 %1065 }
 0x497   : > { %v1068_v57 = vsub.f32 %v1059_v51, %v1066_v56  ;;  %v1063_v58 = vpop.xlane.xlu0 %1062  ;;  %v1382_v51 = vld [vmem:[%s3559_s4 + $0x70] sm:$0xff] }
 0x498   : > { %v1067_v59 = vsub.f32 %v1058_v53, %v1063_v58  ;;  %v2487_v53 = vpack.c.bf16 %v1383_v52, %v1382_v51  ;;  %v1166_v58 = vld [vmem:[%s3559_s4 + $0x10] sm:$0xff]  ;;  %v1614_v51 = vld [vmem:[%s3566_s22 + $0x88] sm:$0xff]  ;;  %v1616_v52 = vld [vmem:[%s3566_s22 + $0x98] sm:$0xff] }
 0x499   : > { %v1071_v60 = vmul.f32 1.442695, %v1068_v57 }
 0x49a   : > { %v1069_v61 = vmul.f32 1.442695, %v1067_v59  ;;  %v1167_v59 = vld [vmem:[%s3559_s4 + $0x18] sm:$0xff] }
 0x49b   : > { %2727 = vpow2.f32 %v1071_v60 }
 0x49c   : > { %2729 = vpow2.f32 %v1069_v61 }
 0x4a5   : > { %v2728_v62 = vpop.eup %2727 }
 0x4a6   : > { %v2730_v63 = vpop.eup %2729  ;;  %v1076_v0 = vsel %vm1060_vm2, %v2728_v62, 0.0 }
 0x4a7   : > { %1077 = vadd.xlane.f32.xlu1 %v1076_v0  ;;  %v1073_v1 = vsel %vm1060_vm2, %v2730_v63, 0.0  ;;  %v1169_v0 = vld [vmem:[%s3559_s4 + $0x28] sm:$0xff] }
 0x4a8   : > { %1074 = vadd.xlane.f32.xlu0 %v1073_v1 }
 0x4b8   : > { %1172 = vrot.lane.b32.xlu1 %v884_v41, %s3084_s5  ;;  %v1164_v41 = vld [vmem:[%s3559_s4] sm:$0xff] }
 0x4bc   : > { %1174 = vrot.lane.b32.xlu1 %v890_v30, %s3084_s5  ;;  %v2491_v30 = vpack.c.bf16 %v1165_v42, %v1164_v41 }
 0x4be   : > { %2714 = vrot.lane.b32.xlu0 %v2713_v46, %s3084_s5  ;;  %v1379_v46 = vld [vmem:[%s3559_s4 + $0x58] sm:$0xff] }
 0x4bf   : > { %v2479_v47 = vpack.c.bf16 %v1379_v46, %v1378_v45  ;;  %v1612_v46 = vld [vmem:[%s3566_s22 + $0x78] sm:$0xff] }
 0x534   : > { %v1078_v4 = vpop.xlane.xlu1 %1077 }
 0x535   : > { %2731 = vrcp.f32 %v1078_v4  ;;  %v1075_v5 = vpop.xlane.xlu0 %1074  ;;  %v1170_v4 = vld [vmem:[%s3559_s4 + $0x30] sm:$0xff] }
 0x536   : > { %2733 = vrcp.f32 %v1075_v5  ;;  %v1171_v5 = vld [vmem:[%s3559_s4 + $0x38] sm:$0xff] }
 0x538   : > { %v1173_v15 = vpop.permute.xlu1 %1172 }
 0x539   : > { %v2715_v6 = vpop.permute.xlu0 %2714 }
 0x53a   : > { %v2717_v7 = vunpack.i.h.bf16 %v2715_v6  ;;  %v2716_v9 = vunpack.i.l.bf16 %v2715_v6  ;;  %v2503_v6 = vpack.c.bf16 %v1171_v5, %v1170_v4  ;;  %v1623_v4 = vld [vmem:[%s3566_s22 + $0xd0] sm:$0xff] }
 0x53c   : > { %v2465_v10 = vpack.c.bf16 %v2717_v7, %v2716_v9  ;;  %v1175_v16 = vpop.permute.xlu1 %1174 }
 0x53e   : > { %2467 = vmatprep.subr.msk.bf16.mxu1 %vm3694_vm1, %v2465_v10 }
 0x53f   : > { %v2732_v11 = vpop.eup %2731 }
 0x540   : > { %v2734_v12 = vpop.eup %2733  ;;  %v1082_v14 = vmul.f32 %v2732_v11, %v2728_v62  ;;  %v2495_v62 = vpack.c.bf16 %v1167_v59, %v1166_v58  ;;  %v1620_v58 = vld [vmem:[%s3566_s22 + $0xb8] sm:$0xff] }
 0x541   : > { %v1081_v13 = vmul.f32 %v2734_v12, %v2730_v63  ;;  %v1168_v63 = vld [vmem:[%s3559_s4 + $0x20] sm:$0xff] }
 0x542   : > { %v2499_v1 = vpack.c.bf16 %v1169_v0, %v1168_v63  ;;  %v1624_v0 = vld [vmem:[%s3566_s22 + $0xd8] sm:$0xff] }
 0x543   : > { %2336 = vmatprep.mubr.msk.f32.mxu1 %vm1060_vm2, %v1081_v13 }
 0x544   : > { %2337 = vmatmul.mubr.msk.f32.vlgmr.msra.gmra.mrb[2].mxu1 %vm1060_vm2, %v1082_v14 }
 0x545   : > { %2470 = vmatpush3.bf16.xpose.msk.msra.mxu1 %vm3694_vm1, %v2465_v10  ;;  %2343 = vmatprep.mubr.msk.f32.mxu1 %vm970_vm0, %v1173_v15 }
 0x546   : > { %2476 = vmatprep.subr.bf16.mxu1 %v2475_v34 }
 0x54c   : > { %2344 = vmatmul.mubr.msk.f32.vlgmr.msra.gmra.mrb[4].mxu1 %vm970_vm0, %v1175_v16  ;;  %v2183_v16 = vld [vmem:[%s705_s2] ss:$0 sm:$0xff] }
 0x54d   : > { %2478 = vmatpush3.bf16.msra.mxu1 %v2475_v34  ;;  %v1610_v34 = vld [vmem:[%s3566_s22 + $0x68] sm:$0xff] }
 0x54e   : > { %2480 = vmatprep.subr.bf16.mxu1 %v2479_v47 }
 0x551   : > { %2482 = vmatpush3.bf16.msra.mxu1 %v2479_v47  ;;  %v2519_v47 = vpack.c.bf16 %v1612_v46, %v1610_v34  ;;  %v1759_v34 = vld [vmem:[%s3569_s24 + $0x28] sm:$0xff] }
 0x617   : > { %v3722_v17 = vpop.f32.mrb[2].mxu1 }
 0x618   : > { %v3724_v18 = vpop.f32.mrb[3].mxu1 }
 0x61f   : > { %v2345_v19 = vpop.f32.mrb[4].mxu1 }
 0x620   : > { %v1264_v20 = vmul.f32 0.125, %v2345_v19  ;;  %v1254_v21 = vpop.f32.mrb[5].mxu1 }
 0x621   : > { %v1263_v22 = vmul.f32 0.125, %v1254_v21  ;;  %v1598_v21 = vld [vmem:[%s3566_s22 + $0x8] sm:$0xff] }
 0x622   : > { %v1268_v23 = vsel %vm1060_vm2, %v1264_v20, -inf }
 0x623   : > { %1269 = vmax.xlane.f32.xlu0 %v1268_v23  ;;  %v1265_v24 = vsel %vm1060_vm2, %v1263_v22, -inf  ;;  %v1597_v23 = vld [vmem:[%s3566_s22] sm:$0xff] }
 0x624   : > { %1266 = vmax.xlane.f32.xlu1 %v1265_v24 }
 0x635   : > { %2719 = vrot.lane.b32.xlu1 %v2718_v48, %s3084_s5  ;;  %v1380_v48 = vld [vmem:[%s3559_s4 + $0x60] sm:$0xff] }
 0x636   : > { %v2483_v50 = vpack.c.bf16 %v1381_v49, %v1380_v48  ;;  %v1609_v48 = vld [vmem:[%s3566_s22 + $0x60] sm:$0xff]  ;;  %v1611_v49 = vld [vmem:[%s3566_s22 + $0x70] sm:$0xff] }
 0x638   : > { %2484 = vmatprep.subr.bf16.mxu1 %v2483_v50 }
 0x639   : > { %2486 = vmatpush3.bf16.msra.mxu1 %v2483_v50  ;;  %v2521_v50 = vpack.c.bf16 %v1611_v49, %v1609_v48  ;;  %v1777_v48 = vld [vmem:[%s3569_s24 + $0xb8] sm:$0xff] }
 0x63a   : > { %2488 = vmatprep.subr.bf16.mxu1 %v2487_v53 }
 0x63d   : > { %2490 = vmatpush3.bf16.msra.mxu1 %v2487_v53  ;;  %v2523_v53 = vpack.c.bf16 %v1616_v52, %v1614_v51  ;;  %v1761_v51 = vld [vmem:[%s3569_s24 + $0x38] sm:$0xff] }
 0x6b0   : > { %v1270_v25 = vpop.xlane.xlu0 %1269 }
 0x6b1   : > { %v1272_v26 = vsub.f32 %v1264_v20, %v1270_v25  ;;  %v1267_v27 = vpop.xlane.xlu1 %1266  ;;  %v1602_v25 = vld [vmem:[%s3566_s22 + $0x28] sm:$0xff] }
 0x6b2   : > { %v1271_v28 = vsub.f32 %v1263_v22, %v1267_v27  ;;  %v1600_v22 = vld [vmem:[%s3566_s22 + $0x18] sm:$0xff] }
 0x6b3   : > { %v1275_v29 = vmul.f32 1.442695, %v1272_v26  ;;  %v2507_v24 = vpack.c.bf16 %v1600_v22, %v1598_v21  ;;  %v1604_v26 = vld [vmem:[%s3566_s22 + $0x38] sm:$0xff] }
 0x6b4   : > { %v1273_v31 = vmul.f32 1.442695, %v1271_v28  ;;  %v2511_v27 = vpack.c.bf16 %v1604_v26, %v1602_v25  ;;  %v1601_v28 = vld [vmem:[%s3566_s22 + $0x20] sm:$0xff] }
 0x6b5   : > { %v2720_v32 = vpop.permute.xlu1 %2719  ;;  %2508 = vmatprep.subr.bf16.mxu1 %v2507_v24 }
 0x6b6   : > { %2735 = vpow2.f32 %v1273_v31  ;;  %v2722_v33 = vunpack.i.h.bf16 %v2720_v32  ;;  %v2721_v35 = vunpack.i.l.bf16 %v2720_v32  ;;  %v1606_v31 = vld [vmem:[%s3566_s22 + $0x48] sm:$0xff]  ;;  %v1608_v32 = vld [vmem:[%s3566_s22 + $0x58] sm:$0xff] }
 0x6b7   : > { %2737 = vpow2.f32 %v1275_v29  ;;  %v1603_v29 = vld [vmem:[%s3566_s22 + $0x30] sm:$0xff] }
 0x6b8   : > { %v2471_v36 = vpack.c.bf16 %v2722_v33, %v2721_v35  ;;  %v2513_v33 = vpack.c.bf16 %v1603_v29, %v1601_v28  ;;  %v2515_v35 = vpack.c.bf16 %v1608_v32, %v1606_v31  ;;  %v2185_v29 = vld [vmem:[%s711_s10] ss:$0 sm:$0xff] }
 0x6ba   : > { %2472 = vmatprep.subr.bf16.mxu0 %v2471_v36 }
 0x6bb   : > { %2474 = vmatpush3.bf16.msra.mxu0 %v2471_v36  ;;  %v1605_v36 = vld [vmem:[%s3566_s22 + $0x40] sm:$0xff] }
 0x6bc   : > { %2492 = vmatprep.subr.bf16.mxu0 %v2491_v30 }
 0x6c0   : > { %v2736_v37 = vpop.eup %2735 }
 0x6c1   : > { %v1277_v38 = vsel %vm1060_vm2, %v2736_v37, 0.0  ;;  %v2738_v39 = vpop.eup %2737 }
 0x6c2   : > { %1278 = vadd.xlane.f32.xlu0 %v1277_v38  ;;  %v1280_v40 = vsel %vm1060_vm2, %v2738_v39, 0.0 }
 0x6c6   : > { %1281 = vadd.xlane.f32.xlu0 %v1280_v40 }
 0x74f   : > { %v1279_v54 = vpop.xlane.xlu0 %1278 }
 0x750   : > { %2739 = vrcp.f32 %v1279_v54  ;;  %v1613_v54 = vld [vmem:[%s3566_s22 + $0x80] sm:$0xff] }
 0x753   : > { %v1282_v55 = vpop.xlane.xlu0 %1281 }
 0x754   : > { %2741 = vrcp.f32 %v1282_v55  ;;  %v1615_v55 = vld [vmem:[%s3566_s22 + $0x90] sm:$0xff] }
 0x75a   : > { %v2740_v56 = vpop.eup %2739 }
 0x75b   : > { %v1285_v57 = vmul.f32 %v2740_v56, %v2736_v37  ;;  %v1607_v37 = vld [vmem:[%s3566_s22 + $0x50] sm:$0xff]  ;;  %v2525_v56 = vpack.c.bf16 %v1615_v55, %v1613_v54  ;;  %v1779_v54 = vld [vmem:[%s3569_s24 + $0xc8] sm:$0xff]  ;;  %v1762_v55 = vld [vmem:[%s3569_s24 + $0x40] sm:$0xff] }
 0x75c   : > { %v2517_v38 = vpack.c.bf16 %v1607_v37, %v1605_v36 }
 0x75d   : > { %2350 = vmatprep.mubr.msk.f32.mxu0 %vm1060_vm2, %v1285_v57  ;;  %v1618_v57 = vld [vmem:[%s3566_s22 + $0xa8] sm:$0xff] }
 0x75e   : > { %v2742_v60 = vpop.eup %2741  ;;  %v2527_v59 = vpack.c.bf16 %v1620_v58, %v1618_v57  ;;  %v1763_v57 = vld [vmem:[%s3569_s24 + $0x48] sm:$0xff]  ;;  %v1780_v58 = vld [vmem:[%s3569_s24 + $0xd0] sm:$0xff] }
 0x75f   : > { %v1286_v61 = vmul.f32 %v2742_v60, %v2738_v39  ;;  %v1617_v60 = vld [vmem:[%s3566_s22 + $0xa0] sm:$0xff] }
 0x761   : > { %2351 = vmatmul.mubr.msk.f32.vlgmr.msra.gmra.mrb[6].mxu0 %vm1060_vm2, %v1286_v61  ;;  %v1619_v61 = vld [vmem:[%s3566_s22 + $0xb0] sm:$0xff] }
 0x762   : > { %2494 = vmatpush3.bf16.msra.mxu0 %v2491_v30  ;;  %2388 = vmatprep.mubr.msk.f32.mxu0 %vm970_vm0, %v3724_v18  ;;  %v2529_v63 = vpack.c.bf16 %v1619_v61, %v1617_v60  ;;  %v2557_v60 = vpack.c.bf16 %v1763_v57, %v1762_v55 }
 0x763   : > { %2496 = vmatprep.subr.bf16.mxu0 %v2495_v62 }
 0x766   : > { %2498 = vmatpush3.bf16.msra.mxu0 %v2495_v62  ;;  %v1622_v62 = vld [vmem:[%s3566_s22 + $0xc8] sm:$0xff] }
 0x767   : > { %2500 = vmatprep.subr.bf16.mxu0 %v2499_v1  ;;  %v2531_v5 = vpack.c.bf16 %v1624_v0, %v1622_v62  ;;  %v1764_v62 = vld [vmem:[%s3569_s24 + $0x50] sm:$0xff]  ;;  %v1782_v0 = vld [vmem:[%s3569_s24 + $0xe0] sm:$0xff] }
 0x76a   : > { %2502 = vmatpush3.bf16.msra.mxu0 %v2499_v1  ;;  %v1621_v1 = vld [vmem:[%s3566_s22 + $0xc0] sm:$0xff] }
 0x76b   : > { %2504 = vmatprep.subr.bf16.mxu0 %v2503_v6 }
 0x76e   : > { %2506 = vmatpush3.bf16.msra.mxu0 %v2503_v6  ;;  %v1626_v6 = vld [vmem:[%s3566_s22 + $0xe8] sm:$0xff] }
 0x771   : > { %2389 = vmatmul.mubr.msk.f32.vlgmr.msra.gmra.mrb[8].mxu0 %vm970_vm0, %v3722_v17 }
 0x834   : > { %v2352_v7 = vpop.f32.mrb[6].mxu0 }
 0x835   : > { %v1367_v9 = vpop.f32.mrb[7].mxu0 }
 0x836   : > { %2369 = vmatprep.mubr.msk.f32.mxu1 %vm970_vm0, %v1367_v9  ;;  %v2533_v9 = vpack.c.bf16 %v1623_v4, %v1621_v1  ;;  %v1783_v1 = vld [vmem:[%s3569_s24 + $0xe8] sm:$0xff] }
 0x837   : > { %2370 = vmatmul.mubr.msk.f32.vlgmr.msra.gmra.mrb[6].mxu1 %vm970_vm0, %v2352_v7  ;;  %v1628_v7 = vld [vmem:[%s3566_s22 + $0xf8] sm:$0xff] }
 0x838   : > { %1705 = vmatprep.mubr.f32.mxu1 %v3083_v8 }
 0x844   : > { %v2390_v10 = vpop.f32.mrb[8].mxu0 }
 0x845   : > { %v1537_v11 = vpop.f32.mrb[9].mxu0 }
 0x90a   : > { %v2371_v12 = vpop.f32.mrb[6].mxu1 }
 0x90b   : > { %v1543_v13 = vadd.f32 %v2390_v10, %v2371_v12  ;;  %v1456_v14 = vpop.f32.mrb[7].mxu1  ;;  %v2535_v10 = vpack.c.bf16 %v1628_v7, %v1626_v6  ;;  %v1627_v12 = vld [vmem:[%s3566_s22 + $0xf0] sm:$0xff]  ;;  %v1766_v6 = vld [vmem:[%s3569_s24 + $0x60] sm:$0xff]  ;;  %v1767_v7 = vld [vmem:[%s3569_s24 + $0x68] sm:$0xff] }
 0x90c   : > { %v1538_v15 = vadd.f32 %v1537_v11, %v1456_v14  ;;  %v1625_v11 = vld [vmem:[%s3566_s22 + $0xe0] sm:$0xff] }
 0x90d   : > { %v1547_v18 = vadd.f32 %v1543_v13, %v3615_v3  ;;  %v2537_v13 = vpack.c.bf16 %v1627_v12, %v1625_v11  ;;  %v1770_v14 = vld [vmem:[%s3569_s24 + $0x80] sm:$0xff]  ;;  %v2565_v11 = vpack.c.bf16 %v1767_v7, %v1766_v6 }
 0x90e   : > { %v1546_v17 = vadd.f32 %v1538_v15, %v3612_v2  ;;  %v1599_v2 = vld [vmem:[%s3566_s22 + $0x10] sm:$0xff]  ;;  %v1771_v15 = vld [vmem:[%s3569_s24 + $0x88] sm:$0xff] }
 0x90f   : > { %v3769_v20 = vadd.f32 %v2183_v16, %v1547_v18  ;;  %v2509_v3 = vpack.c.bf16 %v1599_v2, %v1597_v23  ;;  %v1755_v18 = vld [vmem:[%s3569_s24 + $0x8] sm:$0xff] }
 0x910   : > { %v3766_v19 = vadd.f32 %v2183_v16, %v1546_v17  ;;  %v1754_v16 = vld [vmem:[%s3569_s24] sm:$0xff]  ;;  %v2539_v17 = vpack.c.bf16 %v1771_v15, %v1770_v14  ;;  %v1769_v14 = vld [vmem:[%s3569_s24 + $0x78] sm:$0xff] }
 0x911   : > { %2510 = vmatpush1.bf16.msra.mxu1 %v2509_v3  ;;  %v2541_v21 = vpack.c.bf16 %v1755_v18, %v1754_v16  ;;  %v1631_v16 = vlaneseq }
 0x912   : > { %1559 = vadd.xlane.f32.xlu0 %v3766_v19  ;;  %2512 = vmatprep.subr.bf16.mxu1 %v2511_v27  ;;  %v2184_v27 = vld [vmem:[%s708_s20] ss:$0 sm:$0xff] }
 0x913   : > { %2540 = vmatprep.subr.bf16.mxu0 %v2539_v17  ;;  %v1632_v17 = vshrl.u32 %v1631_v16, 7 }
 0x914   : > { %2542 = vmatpush3.bf16.msra.mxu0 %v2541_v21  ;;  %v1629_v21 = vld [vmem:[%s3603_s19] sm:$0x3]  ;;  %s4061_s19 = sld [smem:[#allocation25_spill]] }
 0x915   : > { %2514 = vmatpush1.bf16.msra.mxu1 %v2513_v33  ;;  %v1633_v18 = vsub.s32 0, %v1632_v17 }
 0x916   : > { %1561 = vadd.xlane.f32.xlu0 %v3769_v20  ;;  %2516 = vmatprep.subr.bf16.mxu1 %v2515_v35 }
 0x919   : > { %2518 = vmatpush1.bf16.msra.mxu1 %v2517_v38  ;;  %v1772_v38 = vld [vmem:[%s3569_s24 + $0x90] sm:$0xff] }
 0x91a   : > { %2520 = vmatprep.subr.bf16.mxu1 %v2519_v47  ;;  %v1776_v47 = vld [vmem:[%s3569_s24 + $0xb0] sm:$0xff]  ;;  %p2187_p8 = scmp.ne.s32.totalorder %s4061_s19, 1 }
 0x91b   : > { %v2551_v49 = vpack.c.bf16 %v1777_v48, %v1776_v47 }
 0x91d   : > { %2522 = vmatpush1.bf16.msra.mxu1 %v2521_v50  ;;  %v1760_v50 = vld [vmem:[%s3569_s24 + $0x30] sm:$0xff] }
 0x91e   : > { %2524 = vmatprep.subr.bf16.mxu1 %v2523_v53  ;;  %v2553_v52 = vpack.c.bf16 %v1761_v51, %v1760_v50  ;;  %v1778_v53 = vld [vmem:[%s3569_s24 + $0xc0] sm:$0xff] }
 0x921   : > { %2526 = vmatpush1.bf16.msra.mxu1 %v2525_v56  ;;  %v2555_v56 = vpack.c.bf16 %v1779_v54, %v1778_v53 }
 0x922   : > { %2528 = vmatprep.subr.bf16.mxu1 %v2527_v59  ;;  %v1781_v59 = vld [vmem:[%s3569_s24 + $0xd8] sm:$0xff] }
 0x923   : > { %v2559_v61 = vpack.c.bf16 %v1781_v59, %v1780_v58 }
 0x925   : > { %2530 = vmatpush1.bf16.msra.mxu1 %v2529_v63  ;;  %v1765_v63 = vld [vmem:[%s3569_s24 + $0x58] sm:$0xff] }
 0x926   : > { %2532 = vmatprep.subr.bf16.mxu1 %v2531_v5  ;;  %v2561_v4 = vpack.c.bf16 %v1765_v63, %v1764_v62  ;;  %v2563_v5 = vpack.c.bf16 %v1783_v1, %v1782_v0 }
 0x929   : > { %2534 = vmatpush1.bf16.msra.mxu1 %v2533_v9  ;;  %v1784_v9 = vld [vmem:[%s3569_s24 + $0xf0] sm:$0xff] }
 0x92a   : > { %2536 = vmatprep.subr.bf16.mxu1 %v2535_v10  ;;  %v1785_v10 = vld [vmem:[%s3569_s24 + $0xf8] sm:$0xff] }
 0x92b   : > { %v2567_v12 = vpack.c.bf16 %v1785_v10, %v1784_v9 }
 0x92d   : > { %2538 = vmatpush1.bf16.msra.mxu1 %v2537_v13  ;;  %v1768_v13 = vld [vmem:[%s3569_s24 + $0x70] sm:$0xff] }
 0x92e   : > { %v2569_v15 = vpack.c.bf16 %v1769_v14, %v1768_v13 }
 0x99f   : > { %v1560_v39 = vpop.xlane.xlu0 %1559 }
 0x9a0   : > { %v1563_v40 = vmul.f32 0.0078125, %v1560_v39  ;;  %v1773_v39 = vld [vmem:[%s3569_s24 + $0x98] sm:$0xff] }
 0x9a2   : > { %v3785_v41 = vsub.f32 %v3766_v19, %v1563_v40  ;;  %v2543_v40 = vpack.c.bf16 %v1773_v39, %v1772_v38 }
 0x9a3   : > { %v1562_v42 = vpop.xlane.xlu0 %1561 }
 0x9a4   : > { %v1564_v30 = vmul.f32 0.0078125, %v1562_v42  ;;  %v1567_v43 = vmul.f32 %v3785_v41, %v3785_v41  ;;  %v1757_v42 = vld [vmem:[%s3569_s24 + $0x18] sm:$0xff]  ;;  %2544 = vmatprep.subr.bf16.mxu0 %v2543_v40 }
 0x9a6   : > { %v3790_v44 = vsub.f32 %v3769_v20, %v1564_v30  ;;  %1569 = vadd.xlane.f32.xlu0 %v1567_v43  ;;  %v1774_v43 = vld [vmem:[%s3569_s24 + $0xa0] sm:$0xff] }
 0x9a8   : > { %v1568_v45 = vmul.f32 %v3790_v44, %v3790_v44 }
 0x9aa   : > { %1571 = vadd.xlane.f32.xlu0 %v1568_v45  ;;  %v1758_v45 = vld [vmem:[%s3569_s24 + $0x20] sm:$0xff] }
 0x9ab   : > { %v2549_v46 = vpack.c.bf16 %v1759_v34, %v1758_v45 }
 0xa33   : > { %v1570_v22 = vpop.xlane.xlu0 %1569 }
 0xa34   : > { %v1573_v23 = vmul.f32 0.0078125, %v1570_v22  ;;  %v1637_v22 = vsub.s32 1, %v1632_v17 }
 0xa36   : > { %v1575_v24 = vadd.f32 1e-05, %v1573_v23  ;;  %v1634_v23 = vrot.slane %v1629_v21, %v1633_v18 }
 0xa37   : > { %v1572_v2 = vpop.xlane.xlu0 %1571 }
 0xa38   : > { %2743 = vrsqrt.f32 %v1575_v24  ;;  %v1574_v25 = vmul.f32 0.0078125, %v1572_v2  ;;  %v1638_v24 = vrot.slane %v1629_v21, %v1637_v22 }
 0xa3a   : > { %v1576_v26 = vadd.f32 1e-05, %v1574_v25 }
 0xa3c   : > { %2745 = vrsqrt.f32 %v1576_v26 }
 0xa42   : > { %v2744_v3 = vpop.eup %2743 }
 0xa43   : > { %v1579_v28 = vmul.f32 %v2744_v3, %v3785_v41  ;;  %v1756_v41 = vld [vmem:[%s3569_s24 + $0x10] sm:$0xff] }
 0xa44   : > { %v2545_v30 = vpack.c.bf16 %v1757_v42, %v1756_v41 }
 0xa45   : > { %v1587_v31 = vmul.f32 %v2184_v27, %v1579_v28 }
 0xa46   : > { %v2746_v32 = vpop.eup %2745  ;;  %2546 = vmatpush3.bf16.msra.mxu0 %v2545_v30 }
 0xa47   : > { %v1595_v33 = vadd.f32 %v2185_v29, %v1587_v31  ;;  %v1580_v35 = vmul.f32 %v2746_v32, %v3790_v44  ;;  %v1775_v44 = vld [vmem:[%s3569_s24 + $0xa8] sm:$0xff] }
 0xa49   : > { %1706 = vmatmul.mubr.f32.vlgmr.msra.gmra.mrb[8].mxu1 %v1595_v33  ;;  %v1588_v36 = vmul.f32 %v2184_v27, %v1580_v35 }
 0xa4a   : > { %1711 = vmatprep.mubr.f32.mxu1 %v3083_v8  ;;  %v2547_v8 = vpack.c.bf16 %v1775_v44, %v1774_v43 }
 0xa4b   : > { %v1596_v37 = vadd.f32 %v2185_v29, %v1588_v36 }
 0xa4c   : > { %2548 = vmatprep.subr.bf16.mxu0 %v2547_v8 }
 0xa4d   : > { %1712 = vmatmul.mubr.f32.gmra.mrb[10].mxu1 %v1596_v37  ;;  %2550 = vmatpush3.bf16.msra.mxu0 %v2549_v46 }
 0xa4e   : > { %2552 = vmatprep.subr.bf16.mxu0 %v2551_v49 }
 0xa51   : > { %2554 = vmatpush3.bf16.msra.mxu0 %v2553_v52 }
 0xa52   : > { %2556 = vmatprep.subr.bf16.mxu0 %v2555_v56 }
 0xa55   : > { %2558 = vmatpush3.bf16.msra.mxu0 %v2557_v60 }
 0xa56   : > { %2560 = vmatprep.subr.bf16.mxu0 %v2559_v61 }
 0xa59   : > { %2562 = vmatpush3.bf16.msra.mxu0 %v2561_v4 }
 0xa5a   : > { %2564 = vmatprep.subr.bf16.mxu0 %v2563_v5  ;;  %v2186_v5 = vld [vmem:[%s718_s25] ss:$0 sm:$0xff] }
 0xa5d   : > { %2566 = vmatpush3.bf16.msra.mxu0 %v2565_v11 }
 0xa5e   : > { %2568 = vmatprep.subr.bf16.mxu0 %v2567_v12 }
 0xa61   : > { %2570 = vmatpush3.bf16.msra.mxu0 %v2569_v15 }
 0xb1c   : > { %v1707_v2 = vpop.f32.mrb[8].mxu1 }
 0xb1d   : > { %v1708_v25 = vadd.f32 %v1707_v2, %v1634_v23  ;;  %v1709_v26 = vpop.f32.mrb[9].mxu1 }
 0xb1e   : > { %v1710_v3 = vadd.f32 %v1709_v26, %v1638_v24 }
 0xb1f   : > { %v1722_v27 = vmul.f32 0.044715, %v1708_v25  ;;  %v1718_v55 = vmul.f32 0.5, %v1708_v25 }
 0xb20   : > { %v1723_v28 = vmul.f32 0.044715, %v1710_v3  ;;  %v1713_v29 = vpop.f32.mrb[10].mxu1  ;;  %v1719_v53 = vmul.f32 0.5, %v1710_v3 }
 0xb21   : > { %v1726_v31 = vmul.f32 %v1722_v27, %v1708_v25  ;;  %v1714_v32 = vadd.f32 %v1713_v29, %v1634_v23  ;;  %v1715_v33 = vpop.f32.mrb[11].mxu1 }
 0xb22   : > { %v1727_v35 = vmul.f32 %v1723_v28, %v1710_v3  ;;  %v1716_v36 = vadd.f32 %v1715_v33, %v1638_v24 }
 0xb23   : > { %v1730_v37 = vmul.f32 %v1726_v31, %v1708_v25  ;;  %v1724_v38 = vmul.f32 0.044715, %v1714_v32  ;;  %v1720_v63 = vmul.f32 0.5, %v1714_v32 }
 0xb24   : > { %v1725_v39 = vmul.f32 0.044715, %v1716_v36  ;;  %v1731_v40 = vmul.f32 %v1727_v35, %v1710_v3  ;;  %v1721_v61 = vmul.f32 0.5, %v1716_v36 }
 0xb25   : > { %v1734_v41 = vadd.f32 %v1730_v37, %v1708_v25  ;;  %v1728_v42 = vmul.f32 %v1724_v38, %v1714_v32 }
 0xb26   : > { %v1729_v30 = vmul.f32 %v1725_v39, %v1716_v36  ;;  %v1735_v43 = vadd.f32 %v1731_v40, %v1710_v3 }
 0xb27   : > { %v1738_v44 = vmul.f32 0.7978846, %v1734_v41  ;;  %v1732_v8 = vmul.f32 %v1728_v42, %v1714_v32 }
 0xb28   : > { %v1739_v45 = vmul.f32 0.7978846, %v1735_v43  ;;  %v1733_v34 = vmul.f32 %v1729_v30, %v1716_v36 }
 0xb29   : > { %2747 = vtanh.f32 %v1738_v44  ;;  %v1736_v46 = vadd.f32 %v1732_v8, %v1714_v32 }
 0xb2a   : > { %2749 = vtanh.f32 %v1739_v45  ;;  %v1737_v47 = vadd.f32 %v1733_v34, %v1716_v36 }
 0xb2b   : > { %v1740_v48 = vmul.f32 0.7978846, %v1736_v46 }
 0xb2c   : > { %v1741_v49 = vmul.f32 0.7978846, %v1737_v47 }
 0xb2d   : > { %2751 = vtanh.f32 %v1740_v48 }
 0xb2e   : > { %2753 = vtanh.f32 %v1741_v49 }
 0xb33   : > { %v2748_v50 = vpop.eup %2747 }
 0xb34   : > { %v2750_v51 = vpop.eup %2749  ;;  %v1746_v52 = vadd.f32 1.0, %v2748_v50 }
 0xb35   : > { %v1747_v54 = vadd.f32 1.0, %v2750_v51 }
 0xb36   : > { %v1750_v59 = vmul.f32 %v1746_v52, %v1718_v55 }
 0xb37   : > { %v2752_v56 = vpop.eup %2751  ;;  %v1751_v57 = vmul.f32 %v1747_v54, %v1719_v53 }
 0xb38   : > { %v2754_v58 = vpop.eup %2753  ;;  %v1748_v60 = vadd.f32 1.0, %v2752_v56 }
 0xb39   : > { %1857 = vmatprep.mubr.f32.mxu0 %v1751_v57  ;;  %v1749_v62 = vadd.f32 1.0, %v2754_v58 }
 0xb3a   : > { %1858 = vmatmul.mubr.f32.vlgmr.msra.gmra.mrb[10].mxu0 %v1750_v59  ;;  %v1752_v1 = vmul.f32 %v1748_v60, %v1720_v63 }
 0xb3b   : > { %v1753_v0 = vmul.f32 %v1749_v62, %v1721_v61 }
 0xb3d   : > { %1862 = vmatprep.mubr.f32.mxu0 %v1753_v0 }
 0xb3e   : > { %1863 = vmatmul.mubr.f32.gmra.mrb[12].mxu0 %v1752_v1 }
 0xc0d   : > { %v2284_v4 = vpop.f32.mrb[10].mxu0 }
 0xc0e   : > { %v2285_v6 = vpop.f32.mrb[11].mxu0 }
 0xc0f   : > { %v2286_v7 = vadd.f32 %v2285_v6, %v2284_v4 }
 0xc11   : > { %v1860_v9 = vadd.f32 %v2286_v7, %v2186_v5  ;;  %v2287_v10 = vpop.f32.mrb[12].mxu0 }
 0xc12   : > { %v2288_v11 = vpop.f32.mrb[13].mxu0 }
 0xc13   : > { %v1868_v12 = vadd.f32 %v1860_v9, %v3766_v19  ;;  %v2289_v13 = vadd.f32 %v2288_v11, %v2287_v10  ;;  %1875 = sbr.rel (%p2187_p8) target bundleno = 3098 (0xc1a), region = 100 }
 0xc15   : > { %1870 = vst [vmem:[#allocation2] sm:$0xff] %v1868_v12  ;;  %v1865_v14 = vadd.f32 %v2289_v13, %v2186_v5  ;;  %1876 = vst [vmem:[%s3607_s15] sm:$0xff] (!%p2187_p8), %v1868_v12 }
 0xc17   : > { %v1869_v15 = vadd.f32 %v1865_v14, %v3769_v20 }
 0xc19   : > { %1871 = vst [vmem:[#allocation2 + $0x8] sm:$0xff] %v1869_v15  ;;  %1877 = vst [vmem:[%s3607_s15 + $0x8] sm:$0xff] (!%p2187_p8), %v1869_v15 }
 0xc1a PF: > { %s4062_s25 = sld [smem:[#allocation26_spill]]  ;;  %s4063_s0 = sld [smem:[#allocation48_spill]] }
 0xc1b   : > { %s1892_s17 = sshll.u32 %s3607_s15, 4  ;;  %s1879_s28 = scalar_lea.sflag [#allocation5], %s3534_s9  ;;  %s3877_s17 = int_to_ptr.vmem [resolvable:$true] %s1892_s17 }
 0xc1c   : > { %s2935_s7 = scalar_lea.vmem %s3877_s17, 256  ;;  %p4064_p5 = scmp.ne.s32.totalorder %s4026_s16, 0 }
 0xc1d   : > { %p2936_p12 = scmp.ne.s32.totalorder %s3877_s17, %s2935_s7  ;;  %s3085_s3 = smov [#allocation14]  }
 0xc1e   : > { %s2939_s8 = sshll.u32 %s3085_s3, 4  ;;  %s2940_s8 = int_to_ptr.vmem [resolvable:$false] %s2939_s8 }
 0xc1f   : > { %p2937_p10 = pnand %p2936_p12, %p4064_p5  ;;  %s2941_s26 = scalar_lea.vmem %s2940_s8, 512 }
 0xc20   : > { %s2197_s23 = sshll.u32 %s4062_s25, 8  ;;  %p2942_p2 = scmp.lt.s32.totalorder %s3877_s17, %s2940_s8 }
 0xc21   : > { %s3874_s30 = scalar_lea.hbm %s4063_s0, %s2197_s23  ;;  %p2938_p3 = pneg %p2937_p10 }
 0xc22   : > { %p2943_p1 = scmp.lt.s32.totalorder %s2941_s26, %s2935_s7 }
 0xc24   : > { %p2944_p11 = por %p2943_p1, %p2942_p2 }
 0xc26   : > { %p2945_p4 = pnand %p2944_p11, %p2938_p3 }
 0xc28   : > { %2948 = shalt.err (!%p2945_p4)
}
 0xc29   : > { %s2949_s15 = scalar_lea.hbm %s3874_s30, 256  ;;  %s2953_s5 = scalar_lea.hbm %s4063_s0, 512 }
 0xc2a   : > { %p2950_p13 = scmp.ne.s32.totalorder %s3874_s30, %s2949_s15  ;;  %p2954_p9 = scmp.lt.u32.totalorder %s3874_s30, %s4063_s0 }
 0xc2b   : > { %p2955_p0 = scmp.lt.u32.totalorder %s2953_s5, %s2949_s15  ;;  %p2957_p12 = scmp.lt.u32.totalorder %s2949_s15, %s3874_s30 }
 0xc2c   : > { %p2951_p6 = pnand %p2950_p13, %p4064_p5 }
 0xc2d   : > { %p2956_p8 = por %p2955_p0, %p2954_p9 }
 0xc2e   : > { %p2952_p7 = pneg %p2951_p6 }
 0xc2f   : > { %p2958_p10 = por %p2957_p12, %p2956_p8 }
 0xc31   : > { %p2959_p3 = pnand %p2958_p10, %p2952_p7 }
 0xc33   : > { %2962 = shalt.err (!%p2959_p3)
}
 0xc34   : > { %s3086_s11 = smov 128   ;;  %s3087_s18 = smov 8  }
 0xc35   : > { %2588 = dma.vmem_to_hbm [thread:$0]  (%p4064_p5), %s3877_s17, 256, %s3874_s30, %s1879_s28, %s3086_s11, %s3086_s11, %s3087_s18  }
 0xc36 PF: > { %s4065_s4 = sld [smem:[#allocation29_spill]]  ;;  %s4066_s22 = sld [smem:[#allocation22_spill]] }
 0xc37   : > { %s4067_s27 = sld [smem:[#allocation34_spill]] }
 0xc3c   : > { %p2614_p2 = scmp.ge.s32.totalorder %s4065_s4, 2  ;;  %s1907_s6 = sand.u32 1, %s4066_s22  }
 0xc3d   : > { %p4068_p1 = scmp.ne.s32.totalorder %s4067_s27, 0  ;;  %s1908_s2 = scalar_lea.sflag [#allocation5], %s1907_s6 }
 0xc3f   : > { %p2610_p11 = pnand %p2614_p2, %p4068_p1 }
 0xc41   : > { %3024 = dma.done.wait (!%p2610_p11), %s1908_s2, 256  }
 0xc42   : > { %3026 = vsyncadd (!%p2610_p11), %s1908_s2, 4294967040  ;;  %s37_s13 = sadd.s32 1, %s4065_s4   ;;  %s4069_s21 = sld [smem:[#allocation20_spill]] }
 0xc43   : > { %p34_p4 = scmp.ge.s32.totalorder %s37_s13, 6   ;;  %s4070_s22 = sld [smem:[#allocation21_spill]] }
 0xc44   : > { %s4071_s23 = sld [smem:[#allocation32_spill]]  ;;  %s4072_s24 = sld [smem:[#allocation23_spill]] }
 0xc45   : > { %s4073_s25 = sld [smem:[#allocation24_spill]]  ;;  %s4074_s26 = sld [smem:[#allocation35_spill]] }
 0xc46   : > { %s4075_s27 = sld [smem:[#allocation27_spill]]  ;;  %s4076_s28 = sld [smem:[#allocation28_spill]] }
 0xc47   : > { %s4077_s29 = sld [smem:[#allocation30_spill]]  ;;  %s4078_s30 = sld [smem:[#allocation33_spill]] }
 0xc48   :  { %36 = sbr.rel (!%p34_p4) target bundleno = 29 (0x1d), region = 200 }
 0xc4f   :  { %1913 = vsyncpa [#allocation4], 1 }
 0xc50   :  { %1915 = vsyncpa [#allocation4 + $0x1], 1 }
 0xc51   :  { %1916 = vsyncpa [#allocation7], 1 }
 0xc52   :  { %1918 = vsyncpa [#allocation7 + $0x1], 1 }
 0xc53   :  { %1919 = vsyncpa [#allocation10], 1 }
 0xc54   :  { %1921 = vsyncpa [#allocation10 + $0x1], 1 }
 0xc55   :  { %1922 = vsyncpa [#allocation13], 1 }
 0xc56   :  { %1924 = vsyncpa [#allocation13 + $0x1], 1 }
 0xc57   :  { %1925 = vsyncpa [#allocation5], 1 }
 0xc58   :  { %1927 = vsyncpa [#allocation5 + $0x1], 1 }

</bundles_post_ra>
